<compile_context>
chip_gen: v7x
topology: tpu7x:2x2x1
jax: 0.10.0
libtpu: 0.0.40
codegen_flags: <defaults>
</compile_context>

<pallas_src>
from functools import partial

import numpy as np
import jax
import jax.numpy as jnp
from jax.experimental import pallas as pl
from jax.experimental.pallas import tpu as pltpu


def att_kernel(W, xf_ref, w1t_ref, w2_ref, wmaps_ref, o_ref):
    Bt, C, HW = xf_ref.shape
    x = xf_ref[...].astype(jnp.float32)                       # (Bt, C, HW)

    # ---------------- channel attention (batched, fused avg/max MLP) -------
    w1t = w1t_ref[...]                                        # (C, Cr) = fc1.weight.T
    w2 = w2_ref[...]                                          # (C, Cr) = fc2.weight
    avg = jnp.mean(x, axis=2, keepdims=True)                  # (Bt, C, 1) AdaptiveAvgPool2d
    mx = jnp.max(x, axis=2, keepdims=True)                    # (Bt, C, 1) AdaptiveMaxPool2d
    ha = jnp.sum(avg * w1t[None, :, :], axis=1, keepdims=True)   # (Bt, 1, Cr) fc1(avg)
    hm = jnp.sum(mx * w1t[None, :, :], axis=1, keepdims=True)    # (Bt, 1, Cr) fc1(max)
    hidden = jnp.maximum(ha, 0.0) + jnp.maximum(hm, 0.0)      # relu; fc2 is linear, no bias
    ca = jax.nn.sigmoid(
        jnp.sum(hidden * w2[None, :, :], axis=2, keepdims=True))  # (Bt, C, 1)

    # ---------------- spatial attention: batched flat 7x7 conv via rolls ---
    a_map = jnp.mean(x, axis=1)                               # (Bt, HW) mean over C
    m_map = jnp.max(x, axis=1)                                # (Bt, HW) max over C
    stacked = jnp.concatenate([a_map, m_map], axis=0)         # (2*Bt, HW): one roll per tap

    acc = jnp.zeros((Bt, HW), jnp.float32)
    for k in range(49):                                       # 7x7 conv, padding=3
        dy, dx = k // 7 - 3, k % 7 - 3
        sh = (-(dy * W + dx)) % HW                            # flat shift of this tap
        r = stacked if sh == 0 else pltpu.roll(stacked, shift=sh, axis=1)
        wa = wmaps_ref[pl.ds(k, 1), :]                        # (1, HW) masked avg-ch weight
        wm = wmaps_ref[pl.ds(49 + k, 1), :]                   # (1, HW) masked max-ch weight
        acc = acc + wa * r[:Bt] + wm * r[Bt:]
    sa = jax.nn.sigmoid(acc)                                  # (Bt, HW)

    # ------------- out = c_attn*x + s_attn*x : one lane-dense store --------
    o_ref[...] = ((ca + sa[:, None, :]) * x).astype(o_ref.dtype)


def _spatial_weight_maps(wsp, H, W):
    """(2, 49) 7x7 conv weights -> (98, HW) per-tap weight maps with the
    zero-padding border mask folded in (rows 0..48 avg-channel, 49..97 max)."""
    HW = H * W
    lane = np.arange(HW)
    wi, hi = lane % W, lane // W
    masks = np.zeros((49, HW), np.float32)
    for k in range(49):
        dy, dx = k // 7 - 3, k % 7 - 3
        ok = (wi + dx >= 0) & (wi + dx < W) & (hi + dy >= 0) & (hi + dy < H)
        masks[k] = ok.astype(np.float32)
    masks = jnp.asarray(masks)                                # (49, HW)
    wa = wsp[0][:, None] * masks                              # (49, HW)
    wm = wsp[1][:, None] * masks                              # (49, HW)
    return jnp.concatenate([wa, wm], axis=0)                  # (98, HW)


def _pick_block_b(B, C, HW, itemsize, target_block_bytes=4 << 20):
    """Largest divisor of B whose block fits the multi-MiB target while
    keeping >= 2 grid steps (so both v7x TensorCores get work)."""
    per_b = max(1, C * HW * itemsize)
    cap = max(1, target_block_bytes // per_b)
    best = 1
    for d in range(1, B + 1):
        if B % d == 0 and d <= cap and (B // d >= 2 or B == 1):
            best = d
    return best


def att_forward(x, w1, w2, wsp, block_b=None, io_dtype=jnp.float32):
    """x: (B,C,H,W).  w1: (C//4,C) fc1 weight.  w2: (C,C//4) fc2 weight.
    wsp: (2,49) spatial 7x7 conv weight (from (1,2,7,7))."""
    B, C, H, W = x.shape
    HW = H * W
    Cr = w1.shape[0]
    xf = x.reshape(B, C, HW).astype(io_dtype)
    w1t = jnp.asarray(w1, jnp.float32).T                      # (C, Cr)
    w2f = jnp.asarray(w2, jnp.float32)                        # (C, Cr)
    wmaps = _spatial_weight_maps(jnp.asarray(wsp, jnp.float32), H, W)   # (98, HW)

    itemsize = jnp.dtype(io_dtype).itemsize
    Bt = block_b if block_b is not None else _pick_block_b(B, C, HW, itemsize)
    assert B % Bt == 0
    block_bytes = Bt * C * HW * itemsize
    # in + out blocks, each double-buffered, plus weights/headroom; capped for v7x.
    vmem_limit = int(min(48 << 20, max(16 << 20, 4 * block_bytes + (4 << 20))))

    out = pl.pallas_call(
        partial(att_kernel, W),
        out_shape=jax.ShapeDtypeStruct((B, C, HW), io_dtype),
        grid=(B // Bt,),
        in_specs=[
            pl.BlockSpec((Bt, C, HW), lambda b: (b, 0, 0)),
            pl.BlockSpec((C, Cr), lambda b: (0, 0)),
            pl.BlockSpec((C, Cr), lambda b: (0, 0)),
            pl.BlockSpec((2 * 49, HW), lambda b: (0, 0)),
        ],
        out_specs=pl.BlockSpec((Bt, C, HW), lambda b: (b, 0, 0)),
        compiler_params=pltpu.CompilerParams(
            dimension_semantics=("parallel",),                # batch steps independent
            vmem_limit_bytes=vmem_limit),
    )(xf, w1t, w2f, wmaps)
    return out.reshape(B, C, H, W).astype(x.dtype)


def att_reference(x, w1, w2, wsp):
    """Pure-JAX reference mirroring the PyTorch module."""
    B, C, H, W = x.shape
    avg = jnp.mean(x, axis=(2, 3), keepdims=True)
    mx = jnp.max(x, axis=(2, 3), keepdims=True)

    def mlp(p):
        p2 = p.reshape(B, C)
        h = jnp.maximum(p2 @ w1.T, 0.0)
        return (h @ w2.T).reshape(B, C, 1, 1)

    c_attn = jax.nn.sigmoid(mlp(avg) + mlp(mx))
    avg_map = jnp.mean(x, axis=1, keepdims=True)
    max_map = jnp.max(x, axis=1, keepdims=True)
    sp_in = jnp.concatenate([avg_map, max_map], axis=1)
    wconv = wsp.reshape(1, 2, 7, 7)
    conv = jax.lax.conv_general_dilated(
        sp_in, wconv, window_strides=(1, 1), padding=((3, 3), (3, 3)),
        dimension_numbers=("NCHW", "OIHW", "NCHW"))
    s_attn = jax.nn.sigmoid(conv)
    return c_attn * x + s_attn * x


if __name__ == "__main__":
    B, C, H, W = 2, 8, 16, 16
    Cr = C // 4
    key = jax.random.PRNGKey(0)
    k1, k2, k3, k4 = jax.random.split(key, 4)
    x = jax.random.normal(k1, (B, C, H, W), jnp.float32)
    w1 = jax.random.normal(k2, (Cr, C), jnp.float32) * 0.3    # fc1 (1x1 conv, no bias)
    w2 = jax.random.normal(k3, (C, Cr), jnp.float32) * 0.3    # fc2 (1x1 conv, no bias)
    wsp = jax.random.normal(k4, (2, 49), jnp.float32) * 0.1   # spatial 7x7 conv, no bias

    out = jax.block_until_ready(att_forward(x, w1, w2, wsp))
    ref = att_reference(x, w1, w2, wsp)
    assert out.shape == (B, C, H, W)
    assert jnp.allclose(out, ref, rtol=1e-4, atol=1e-4), \
        float(jnp.max(jnp.abs(out - ref)))
    print("KERNEL_OK")
</pallas_src>

<mosaic_0001>
module attributes {stable_mosaic.version = 11 : i64} {
  func.func @att_kernel(%arg0: i32, %arg1: memref<1x8x256xf32, #tpu.memory_space<vmem>>, %arg2: memref<8x2xf32, #tpu.memory_space<vmem>>, %arg3: memref<8x2xf32, #tpu.memory_space<vmem>>, %arg4: memref<98x256xf32, #tpu.memory_space<vmem>>, %arg5: memref<1x8x256xf32, #tpu.memory_space<vmem>>) attributes {dimension_semantics = [#tpu.dimension_semantics<parallel>], iteration_bounds = array<i64: 2>, scalar_prefetch = 0 : i64, scratch_operands = 0 : i64, tpu.core_type = #tpu.core_type<tc>, window_params = [{transform_indices = @transform_0, window_bounds = array<i64: 1, 8, 256>}, {pipeline_mode = #tpu.pipeline_mode<synchronous>, transform_indices = @transform_1, window_bounds = array<i64: 8, 2>}, {pipeline_mode = #tpu.pipeline_mode<synchronous>, transform_indices = @transform_2, window_bounds = array<i64: 8, 2>}, {pipeline_mode = #tpu.pipeline_mode<synchronous>, transform_indices = @transform_3, window_bounds = array<i64: 98, 256>}, {transform_indices = @transform_4, window_bounds = array<i64: 1, 8, 256>}]} {
    %c0 = arith.constant 0 : index
    %c0_0 = arith.constant 0 : index
    %c0_1 = arith.constant 0 : index
    %0 = vector.load %arg1[%c0, %c0_0, %c0_1] : memref<1x8x256xf32, #tpu.memory_space<vmem>>, vector<1x8x256xf32>
    %c0_2 = arith.constant 0 : index
    %c0_3 = arith.constant 0 : index
    %1 = vector.load %arg2[%c0_2, %c0_3] : memref<8x2xf32, #tpu.memory_space<vmem>>, vector<8x2xf32>
    %c0_4 = arith.constant 0 : index
    %c0_5 = arith.constant 0 : index
    %2 = vector.load %arg3[%c0_4, %c0_5] : memref<8x2xf32, #tpu.memory_space<vmem>>, vector<8x2xf32>
    %cst = arith.constant dense<0.000000e+00> : vector<1x8xf32>
    %3 = vector.multi_reduction <add>, %0, %cst [2] : vector<1x8x256xf32> to vector<1x8xf32>
    %4 = vector.shape_cast %3 : vector<1x8xf32> to vector<1x8x1xf32>
    %cst_6 = arith.constant 2.560000e+02 : f32
    %5 = vector.broadcast %cst_6 : f32 to vector<1x8x1xf32>
    %6 = arith.divf %4, %5 : vector<1x8x1xf32>
    %cst_7 = arith.constant dense<0xFF800000> : vector<1x8xf32>
    %7 = vector.multi_reduction <maximumf>, %0, %cst_7 [2] : vector<1x8x256xf32> to vector<1x8xf32>
    %8 = vector.shape_cast %7 : vector<1x8xf32> to vector<1x8x1xf32>
    %9 = vector.shape_cast %1 : vector<8x2xf32> to vector<1x8x2xf32>
    %10 = vector.broadcast %6 : vector<1x8x1xf32> to vector<1x8x2xf32>
    %11 = arith.mulf %10, %9 : vector<1x8x2xf32>
    %cst_8 = arith.constant dense<0.000000e+00> : vector<1x2xf32>
    %12 = vector.multi_reduction <add>, %11, %cst_8 [1] : vector<1x8x2xf32> to vector<1x2xf32>
    %13 = vector.shape_cast %12 : vector<1x2xf32> to vector<1x1x2xf32>
    %14 = vector.shape_cast %1 : vector<8x2xf32> to vector<1x8x2xf32>
    %15 = vector.broadcast %8 : vector<1x8x1xf32> to vector<1x8x2xf32>
    %16 = arith.mulf %15, %14 : vector<1x8x2xf32>
    %cst_9 = arith.constant dense<0.000000e+00> : vector<1x2xf32>
    %17 = vector.multi_reduction <add>, %16, %cst_9 [1] : vector<1x8x2xf32> to vector<1x2xf32>
    %18 = vector.shape_cast %17 : vector<1x2xf32> to vector<1x1x2xf32>
    %cst_10 = arith.constant 0.000000e+00 : f32
    %19 = vector.broadcast %cst_10 : f32 to vector<1x1x2xf32>
    %20 = arith.maximumf %13, %19 : vector<1x1x2xf32>
    %cst_11 = arith.constant 0.000000e+00 : f32
    %21 = vector.broadcast %cst_11 : f32 to vector<1x1x2xf32>
    %22 = arith.maximumf %18, %21 : vector<1x1x2xf32>
    %23 = arith.addf %20, %22 : vector<1x1x2xf32>
    %24 = vector.shape_cast %2 : vector<8x2xf32> to vector<1x8x2xf32>
    %25 = vector.broadcast %23 : vector<1x1x2xf32> to vector<1x8x2xf32>
    %26 = arith.mulf %25, %24 : vector<1x8x2xf32>
    %cst_12 = arith.constant dense<0.000000e+00> : vector<1x8xf32>
    %27 = vector.multi_reduction <add>, %26, %cst_12 [2] : vector<1x8x2xf32> to vector<1x8xf32>
    %28 = vector.shape_cast %27 : vector<1x8xf32> to vector<1x8x1xf32>
    %29 = arith.negf %28 : vector<1x8x1xf32>
    %30 = math.exp %29 : vector<1x8x1xf32>
    %cst_13 = arith.constant 1.000000e+00 : f32
    %31 = vector.broadcast %cst_13 : f32 to vector<1x8x1xf32>
    %32 = arith.addf %31, %30 : vector<1x8x1xf32>
    %33 = arith.divf %31, %32 : vector<1x8x1xf32>
    %cst_14 = arith.constant dense<0.000000e+00> : vector<1x256xf32>
    %34 = vector.multi_reduction <add>, %0, %cst_14 [1] : vector<1x8x256xf32> to vector<1x256xf32>
    %cst_15 = arith.constant 8.000000e+00 : f32
    %35 = vector.broadcast %cst_15 : f32 to vector<1x256xf32>
    %36 = arith.divf %34, %35 : vector<1x256xf32>
    %cst_16 = arith.constant dense<0xFF800000> : vector<1x256xf32>
    %37 = vector.multi_reduction <maximumf>, %0, %cst_16 [1] : vector<1x8x256xf32> to vector<1x256xf32>
    %38 = tpu.concatenate %36, %37 in 0 : vector<1x256xf32>, vector<1x256xf32> -> vector<2x256xf32>
    %cst_17 = arith.constant 0.000000e+00 : f32
    %39 = vector.broadcast %cst_17 : f32 to vector<1x256xf32>
    %c51_i32 = arith.constant 51 : i32
    %40 = tpu.dynamic_rotate %38 by %c51_i32 dim 1 : vector<2x256xf32>, i32 -> vector<2x256xf32>
    %c0_18 = arith.constant 0 : index
    %c0_19 = arith.constant 0 : index
    %41 = vector.load %arg4[%c0_18, %c0_19] : memref<98x256xf32, #tpu.memory_space<vmem>>, vector<1x256xf32>
    %c49 = arith.constant 49 : index
    %c0_20 = arith.constant 0 : index
    %42 = vector.load %arg4[%c49, %c0_20] : memref<98x256xf32, #tpu.memory_space<vmem>>, vector<1x256xf32>
    %43 = vector.extract_strided_slice %40 {offsets = [0, 0], sizes = [1, 256], strides = [1, 1]} : vector<2x256xf32> to vector<1x256xf32>
    %44 = arith.mulf %41, %43 : vector<1x256xf32>
    %45 = arith.addf %39, %44 : vector<1x256xf32>
    %46 = vector.extract_strided_slice %40 {offsets = [1, 0], sizes = [1, 256], strides = [1, 1]} : vector<2x256xf32> to vector<1x256xf32>
    %47 = arith.mulf %42, %46 : vector<1x256xf32>
    %48 = arith.addf %45, %47 : vector<1x256xf32>
    %c50_i32 = arith.constant 50 : i32
    %49 = tpu.dynamic_rotate %38 by %c50_i32 dim 1 : vector<2x256xf32>, i32 -> vector<2x256xf32>
    %c1 = arith.constant 1 : index
    %c0_21 = arith.constant 0 : index
    %50 = vector.load %arg4[%c1, %c0_21] : memref<98x256xf32, #tpu.memory_space<vmem>>, vector<1x256xf32>
    %c50 = arith.constant 50 : index
    %c0_22 = arith.constant 0 : index
    %51 = vector.load %arg4[%c50, %c0_22] : memref<98x256xf32, #tpu.memory_space<vmem>>, vector<1x256xf32>
    %52 = vector.extract_strided_slice %49 {offsets = [0, 0], sizes = [1, 256], strides = [1, 1]} : vector<2x256xf32> to vector<1x256xf32>
    %53 = arith.mulf %50, %52 : vector<1x256xf32>
    %54 = arith.addf %48, %53 : vector<1x256xf32>
    %55 = vector.extract_strided_slice %49 {offsets = [1, 0], sizes = [1, 256], strides = [1, 1]} : vector<2x256xf32> to vector<1x256xf32>
    %56 = arith.mulf %51, %55 : vector<1x256xf32>
    %57 = arith.addf %54, %56 : vector<1x256xf32>
    %c49_i32 = arith.constant 49 : i32
    %58 = tpu.dynamic_rotate %38 by %c49_i32 dim 1 : vector<2x256xf32>, i32 -> vector<2x256xf32>
    %c2 = arith.constant 2 : index
    %c0_23 = arith.constant 0 : index
    %59 = vector.load %arg4[%c2, %c0_23] : memref<98x256xf32, #tpu.memory_space<vmem>>, vector<1x256xf32>
    %c51 = arith.constant 51 : index
    %c0_24 = arith.constant 0 : index
    %60 = vector.load %arg4[%c51, %c0_24] : memref<98x256xf32, #tpu.memory_space<vmem>>, vector<1x256xf32>
    %61 = vector.extract_strided_slice %58 {offsets = [0, 0], sizes = [1, 256], strides = [1, 1]} : vector<2x256xf32> to vector<1x256xf32>
    %62 = arith.mulf %59, %61 : vector<1x256xf32>
    %63 = arith.addf %57, %62 : vector<1x256xf32>
    %64 = vector.extract_strided_slice %58 {offsets = [1, 0], sizes = [1, 256], strides = [1, 1]} : vector<2x256xf32> to vector<1x256xf32>
    %65 = arith.mulf %60, %64 : vector<1x256xf32>
    %66 = arith.addf %63, %65 : vector<1x256xf32>
    %c48_i32 = arith.constant 48 : i32
    %67 = tpu.dynamic_rotate %38 by %c48_i32 dim 1 : vector<2x256xf32>, i32 -> vector<2x256xf32>
    %c3 = arith.constant 3 : index
    %c0_25 = arith.constant 0 : index
    %68 = vector.load %arg4[%c3, %c0_25] : memref<98x256xf32, #tpu.memory_space<vmem>>, vector<1x256xf32>
    %c52 = arith.constant 52 : index
    %c0_26 = arith.constant 0 : index
    %69 = vector.load %arg4[%c52, %c0_26] : memref<98x256xf32, #tpu.memory_space<vmem>>, vector<1x256xf32>
    %70 = vector.extract_strided_slice %67 {offsets = [0, 0], sizes = [1, 256], strides = [1, 1]} : vector<2x256xf32> to vector<1x256xf32>
    %71 = arith.mulf %68, %70 : vector<1x256xf32>
    %72 = arith.addf %66, %71 : vector<1x256xf32>
    %73 = vector.extract_strided_slice %67 {offsets = [1, 0], sizes = [1, 256], strides = [1, 1]} : vector<2x256xf32> to vector<1x256xf32>
    %74 = arith.mulf %69, %73 : vector<1x256xf32>
    %75 = arith.addf %72, %74 : vector<1x256xf32>
    %c47_i32 = arith.constant 47 : i32
    %76 = tpu.dynamic_rotate %38 by %c47_i32 dim 1 : vector<2x256xf32>, i32 -> vector<2x256xf32>
    %c4 = arith.constant 4 : index
    %c0_27 = arith.constant 0 : index
    %77 = vector.load %arg4[%c4, %c0_27] : memref<98x256xf32, #tpu.memory_space<vmem>>, vector<1x256xf32>
    %c53 = arith.constant 53 : index
    %c0_28 = arith.constant 0 : index
    %78 = vector.load %arg4[%c53, %c0_28] : memref<98x256xf32, #tpu.memory_space<vmem>>, vector<1x256xf32>
    %79 = vector.extract_strided_slice %76 {offsets = [0, 0], sizes = [1, 256], strides = [1, 1]} : vector<2x256xf32> to vector<1x256xf32>
    %80 = arith.mulf %77, %79 : vector<1x256xf32>
    %81 = arith.addf %75, %80 : vector<1x256xf32>
    %82 = vector.extract_strided_slice %76 {offsets = [1, 0], sizes = [1, 256], strides = [1, 1]} : vector<2x256xf32> to vector<1x256xf32>
    %83 = arith.mulf %78, %82 : vector<1x256xf32>
    %84 = arith.addf %81, %83 : vector<1x256xf32>
    %c46_i32 = arith.constant 46 : i32
    %85 = tpu.dynamic_rotate %38 by %c46_i32 dim 1 : vector<2x256xf32>, i32 -> vector<2x256xf32>
    %c5 = arith.constant 5 : index
    %c0_29 = arith.constant 0 : index
    %86 = vector.load %arg4[%c5, %c0_29] : memref<98x256xf32, #tpu.memory_space<vmem>>, vector<1x256xf32>
    %c54 = arith.constant 54 : index
    %c0_30 = arith.constant 0 : index
    %87 = vector.load %arg4[%c54, %c0_30] : memref<98x256xf32, #tpu.memory_space<vmem>>, vector<1x256xf32>
    %88 = vector.extract_strided_slice %85 {offsets = [0, 0], sizes = [1, 256], strides = [1, 1]} : vector<2x256xf32> to vector<1x256xf32>
    %89 = arith.mulf %86, %88 : vector<1x256xf32>
    %90 = arith.addf %84, %89 : vector<1x256xf32>
    %91 = vector.extract_strided_slice %85 {offsets = [1, 0], sizes = [1, 256], strides = [1, 1]} : vector<2x256xf32> to vector<1x256xf32>
    %92 = arith.mulf %87, %91 : vector<1x256xf32>
    %93 = arith.addf %90, %92 : vector<1x256xf32>
    %c45_i32 = arith.constant 45 : i32
    %94 = tpu.dynamic_rotate %38 by %c45_i32 dim 1 : vector<2x256xf32>, i32 -> vector<2x256xf32>
    %c6 = arith.constant 6 : index
    %c0_31 = arith.constant 0 : index
    %95 = vector.load %arg4[%c6, %c0_31] : memref<98x256xf32, #tpu.memory_space<vmem>>, vector<1x256xf32>
    %c55 = arith.constant 55 : index
    %c0_32 = arith.constant 0 : index
    %96 = vector.load %arg4[%c55, %c0_32] : memref<98x256xf32, #tpu.memory_space<vmem>>, vector<1x256xf32>
    %97 = vector.extract_strided_slice %94 {offsets = [0, 0], sizes = [1, 256], strides = [1, 1]} : vector<2x256xf32> to vector<1x256xf32>
    %98 = arith.mulf %95, %97 : vector<1x256xf32>
    %99 = arith.addf %93, %98 : vector<1x256xf32>
    %100 = vector.extract_strided_slice %94 {offsets = [1, 0], sizes = [1, 256], strides = [1, 1]} : vector<2x256xf32> to vector<1x256xf32>
    %101 = arith.mulf %96, %100 : vector<1x256xf32>
    %102 = arith.addf %99, %101 : vector<1x256xf32>
    %c35_i32 = arith.constant 35 : i32
    %103 = tpu.dynamic_rotate %38 by %c35_i32 dim 1 : vector<2x256xf32>, i32 -> vector<2x256xf32>
    %c7 = arith.constant 7 : index
    %c0_33 = arith.constant 0 : index
    %104 = vector.load %arg4[%c7, %c0_33] : memref<98x256xf32, #tpu.memory_space<vmem>>, vector<1x256xf32>
    %c56 = arith.constant 56 : index
    %c0_34 = arith.constant 0 : index
    %105 = vector.load %arg4[%c56, %c0_34] : memref<98x256xf32, #tpu.memory_space<vmem>>, vector<1x256xf32>
    %106 = vector.extract_strided_slice %103 {offsets = [0, 0], sizes = [1, 256], strides = [1, 1]} : vector<2x256xf32> to vector<1x256xf32>
    %107 = arith.mulf %104, %106 : vector<1x256xf32>
    %108 = arith.addf %102, %107 : vector<1x256xf32>
    %109 = vector.extract_strided_slice %103 {offsets = [1, 0], sizes = [1, 256], strides = [1, 1]} : vector<2x256xf32> to vector<1x256xf32>
    %110 = arith.mulf %105, %109 : vector<1x256xf32>
    %111 = arith.addf %108, %110 : vector<1x256xf32>
    %c34_i32 = arith.constant 34 : i32
    %112 = tpu.dynamic_rotate %38 by %c34_i32 dim 1 : vector<2x256xf32>, i32 -> vector<2x256xf32>
    %c8 = arith.constant 8 : index
    %c0_35 = arith.constant 0 : index
    %113 = vector.load %arg4[%c8, %c0_35] : memref<98x256xf32, #tpu.memory_space<vmem>>, vector<1x256xf32>
    %c57 = arith.constant 57 : index
    %c0_36 = arith.constant 0 : index
    %114 = vector.load %arg4[%c57, %c0_36] : memref<98x256xf32, #tpu.memory_space<vmem>>, vector<1x256xf32>
    %115 = vector.extract_strided_slice %112 {offsets = [0, 0], sizes = [1, 256], strides = [1, 1]} : vector<2x256xf32> to vector<1x256xf32>
    %116 = arith.mulf %113, %115 : vector<1x256xf32>
    %117 = arith.addf %111, %116 : vector<1x256xf32>
    %118 = vector.extract_strided_slice %112 {offsets = [1, 0], sizes = [1, 256], strides = [1, 1]} : vector<2x256xf32> to vector<1x256xf32>
    %119 = arith.mulf %114, %118 : vector<1x256xf32>
    %120 = arith.addf %117, %119 : vector<1x256xf32>
    %c33_i32 = arith.constant 33 : i32
    %121 = tpu.dynamic_rotate %38 by %c33_i32 dim 1 : vector<2x256xf32>, i32 -> vector<2x256xf32>
    %c9 = arith.constant 9 : index
    %c0_37 = arith.constant 0 : index
    %122 = vector.load %arg4[%c9, %c0_37] : memref<98x256xf32, #tpu.memory_space<vmem>>, vector<1x256xf32>
    %c58 = arith.constant 58 : index
    %c0_38 = arith.constant 0 : index
    %123 = vector.load %arg4[%c58, %c0_38] : memref<98x256xf32, #tpu.memory_space<vmem>>, vector<1x256xf32>
    %124 = vector.extract_strided_slice %121 {offsets = [0, 0], sizes = [1, 256], strides = [1, 1]} : vector<2x256xf32> to vector<1x256xf32>
    %125 = arith.mulf %122, %124 : vector<1x256xf32>
    %126 = arith.addf %120, %125 : vector<1x256xf32>
    %127 = vector.extract_strided_slice %121 {offsets = [1, 0], sizes = [1, 256], strides = [1, 1]} : vector<2x256xf32> to vector<1x256xf32>
    %128 = arith.mulf %123, %127 : vector<1x256xf32>
    %129 = arith.addf %126, %128 : vector<1x256xf32>
    %c32_i32 = arith.constant 32 : i32
    %130 = tpu.dynamic_rotate %38 by %c32_i32 dim 1 : vector<2x256xf32>, i32 -> vector<2x256xf32>
    %c10 = arith.constant 10 : index
    %c0_39 = arith.constant 0 : index
    %131 = vector.load %arg4[%c10, %c0_39] : memref<98x256xf32, #tpu.memory_space<vmem>>, vector<1x256xf32>
    %c59 = arith.constant 59 : index
    %c0_40 = arith.constant 0 : index
    %132 = vector.load %arg4[%c59, %c0_40] : memref<98x256xf32, #tpu.memory_space<vmem>>, vector<1x256xf32>
    %133 = vector.extract_strided_slice %130 {offsets = [0, 0], sizes = [1, 256], strides = [1, 1]} : vector<2x256xf32> to vector<1x256xf32>
    %134 = arith.mulf %131, %133 : vector<1x256xf32>
    %135 = arith.addf %129, %134 : vector<1x256xf32>
    %136 = vector.extract_strided_slice %130 {offsets = [1, 0], sizes = [1, 256], strides = [1, 1]} : vector<2x256xf32> to vector<1x256xf32>
    %137 = arith.mulf %132, %136 : vector<1x256xf32>
    %138 = arith.addf %135, %137 : vector<1x256xf32>
    %c31_i32 = arith.constant 31 : i32
    %139 = tpu.dynamic_rotate %38 by %c31_i32 dim 1 : vector<2x256xf32>, i32 -> vector<2x256xf32>
    %c11 = arith.constant 11 : index
    %c0_41 = arith.constant 0 : index
    %140 = vector.load %arg4[%c11, %c0_41] : memref<98x256xf32, #tpu.memory_space<vmem>>, vector<1x256xf32>
    %c60 = arith.constant 60 : index
    %c0_42 = arith.constant 0 : index
    %141 = vector.load %arg4[%c60, %c0_42] : memref<98x256xf32, #tpu.memory_space<vmem>>, vector<1x256xf32>
    %142 = vector.extract_strided_slice %139 {offsets = [0, 0], sizes = [1, 256], strides = [1, 1]} : vector<2x256xf32> to vector<1x256xf32>
    %143 = arith.mulf %140, %142 : vector<1x256xf32>
    %144 = arith.addf %138, %143 : vector<1x256xf32>
    %145 = vector.extract_strided_slice %139 {offsets = [1, 0], sizes = [1, 256], strides = [1, 1]} : vector<2x256xf32> to vector<1x256xf32>
    %146 = arith.mulf %141, %145 : vector<1x256xf32>
    %147 = arith.addf %144, %146 : vector<1x256xf32>
    %c30_i32 = arith.constant 30 : i32
    %148 = tpu.dynamic_rotate %38 by %c30_i32 dim 1 : vector<2x256xf32>, i32 -> vector<2x256xf32>
    %c12 = arith.constant 12 : index
    %c0_43 = arith.constant 0 : index
    %149 = vector.load %arg4[%c12, %c0_43] : memref<98x256xf32, #tpu.memory_space<vmem>>, vector<1x256xf32>
    %c61 = arith.constant 61 : index
    %c0_44 = arith.constant 0 : index
    %150 = vector.load %arg4[%c61, %c0_44] : memref<98x256xf32, #tpu.memory_space<vmem>>, vector<1x256xf32>
    %151 = vector.extract_strided_slice %148 {offsets = [0, 0], sizes = [1, 256], strides = [1, 1]} : vector<2x256xf32> to vector<1x256xf32>
    %152 = arith.mulf %149, %151 : vector<1x256xf32>
    %153 = arith.addf %147, %152 : vector<1x256xf32>
    %154 = vector.extract_strided_slice %148 {offsets = [1, 0], sizes = [1, 256], strides = [1, 1]} : vector<2x256xf32> to vector<1x256xf32>
    %155 = arith.mulf %150, %154 : vector<1x256xf32>
    %156 = arith.addf %153, %155 : vector<1x256xf32>
    %c29_i32 = arith.constant 29 : i32
    %157 = tpu.dynamic_rotate %38 by %c29_i32 dim 1 : vector<2x256xf32>, i32 -> vector<2x256xf32>
    %c13 = arith.constant 13 : index
    %c0_45 = arith.constant 0 : index
    %158 = vector.load %arg4[%c13, %c0_45] : memref<98x256xf32, #tpu.memory_space<vmem>>, vector<1x256xf32>
    %c62 = arith.constant 62 : index
    %c0_46 = arith.constant 0 : index
    %159 = vector.load %arg4[%c62, %c0_46] : memref<98x256xf32, #tpu.memory_space<vmem>>, vector<1x256xf32>
    %160 = vector.extract_strided_slice %157 {offsets = [0, 0], sizes = [1, 256], strides = [1, 1]} : vector<2x256xf32> to vector<1x256xf32>
    %161 = arith.mulf %158, %160 : vector<1x256xf32>
    %162 = arith.addf %156, %161 : vector<1x256xf32>
    %163 = vector.extract_strided_slice %157 {offsets = [1, 0], sizes = [1, 256], strides = [1, 1]} : vector<2x256xf32> to vector<1x256xf32>
    %164 = arith.mulf %159, %163 : vector<1x256xf32>
    %165 = arith.addf %162, %164 : vector<1x256xf32>
    %c19_i32 = arith.constant 19 : i32
    %166 = tpu.dynamic_rotate %38 by %c19_i32 dim 1 : vector<2x256xf32>, i32 -> vector<2x256xf32>
    %c14 = arith.constant 14 : index
    %c0_47 = arith.constant 0 : index
    %167 = vector.load %arg4[%c14, %c0_47] : memref<98x256xf32, #tpu.memory_space<vmem>>, vector<1x256xf32>
    %c63 = arith.constant 63 : index
    %c0_48 = arith.constant 0 : index
    %168 = vector.load %arg4[%c63, %c0_48] : memref<98x256xf32, #tpu.memory_space<vmem>>, vector<1x256xf32>
    %169 = vector.extract_strided_slice %166 {offsets = [0, 0], sizes = [1, 256], strides = [1, 1]} : vector<2x256xf32> to vector<1x256xf32>
    %170 = arith.mulf %167, %169 : vector<1x256xf32>
    %171 = arith.addf %165, %170 : vector<1x256xf32>
    %172 = vector.extract_strided_slice %166 {offsets = [1, 0], sizes = [1, 256], strides = [1, 1]} : vector<2x256xf32> to vector<1x256xf32>
    %173 = arith.mulf %168, %172 : vector<1x256xf32>
    %174 = arith.addf %171, %173 : vector<1x256xf32>
    %c18_i32 = arith.constant 18 : i32
    %175 = tpu.dynamic_rotate %38 by %c18_i32 dim 1 : vector<2x256xf32>, i32 -> vector<2x256xf32>
    %c15 = arith.constant 15 : index
    %c0_49 = arith.constant 0 : index
    %176 = vector.load %arg4[%c15, %c0_49] : memref<98x256xf32, #tpu.memory_space<vmem>>, vector<1x256xf32>
    %c64 = arith.constant 64 : index
    %c0_50 = arith.constant 0 : index
    %177 = vector.load %arg4[%c64, %c0_50] : memref<98x256xf32, #tpu.memory_space<vmem>>, vector<1x256xf32>
    %178 = vector.extract_strided_slice %175 {offsets = [0, 0], sizes = [1, 256], strides = [1, 1]} : vector<2x256xf32> to vector<1x256xf32>
    %179 = arith.mulf %176, %178 : vector<1x256xf32>
    %180 = arith.addf %174, %179 : vector<1x256xf32>
    %181 = vector.extract_strided_slice %175 {offsets = [1, 0], sizes = [1, 256], strides = [1, 1]} : vector<2x256xf32> to vector<1x256xf32>
    %182 = arith.mulf %177, %181 : vector<1x256xf32>
    %183 = arith.addf %180, %182 : vector<1x256xf32>
    %c17_i32 = arith.constant 17 : i32
    %184 = tpu.dynamic_rotate %38 by %c17_i32 dim 1 : vector<2x256xf32>, i32 -> vector<2x256xf32>
    %c16 = arith.constant 16 : index
    %c0_51 = arith.constant 0 : index
    %185 = vector.load %arg4[%c16, %c0_51] : memref<98x256xf32, #tpu.memory_space<vmem>>, vector<1x256xf32>
    %c65 = arith.constant 65 : index
    %c0_52 = arith.constant 0 : index
    %186 = vector.load %arg4[%c65, %c0_52] : memref<98x256xf32, #tpu.memory_space<vmem>>, vector<1x256xf32>
    %187 = vector.extract_strided_slice %184 {offsets = [0, 0], sizes = [1, 256], strides = [1, 1]} : vector<2x256xf32> to vector<1x256xf32>
    %188 = arith.mulf %185, %187 : vector<1x256xf32>
    %189 = arith.addf %183, %188 : vector<1x256xf32>
    %190 = vector.extract_strided_slice %184 {offsets = [1, 0], sizes = [1, 256], strides = [1, 1]} : vector<2x256xf32> to vector<1x256xf32>
    %191 = arith.mulf %186, %190 : vector<1x256xf32>
    %192 = arith.addf %189, %191 : vector<1x256xf32>
    %c16_i32 = arith.constant 16 : i32
    %193 = tpu.dynamic_rotate %38 by %c16_i32 dim 1 : vector<2x256xf32>, i32 -> vector<2x256xf32>
    %c17 = arith.constant 17 : index
    %c0_53 = arith.constant 0 : index
    %194 = vector.load %arg4[%c17, %c0_53] : memref<98x256xf32, #tpu.memory_space<vmem>>, vector<1x256xf32>
    %c66 = arith.constant 66 : index
    %c0_54 = arith.constant 0 : index
    %195 = vector.load %arg4[%c66, %c0_54] : memref<98x256xf32, #tpu.memory_space<vmem>>, vector<1x256xf32>
    %196 = vector.extract_strided_slice %193 {offsets = [0, 0], sizes = [1, 256], strides = [1, 1]} : vector<2x256xf32> to vector<1x256xf32>
    %197 = arith.mulf %194, %196 : vector<1x256xf32>
    %198 = arith.addf %192, %197 : vector<1x256xf32>
    %199 = vector.extract_strided_slice %193 {offsets = [1, 0], sizes = [1, 256], strides = [1, 1]} : vector<2x256xf32> to vector<1x256xf32>
    %200 = arith.mulf %195, %199 : vector<1x256xf32>
    %201 = arith.addf %198, %200 : vector<1x256xf32>
    %c15_i32 = arith.constant 15 : i32
    %202 = tpu.dynamic_rotate %38 by %c15_i32 dim 1 : vector<2x256xf32>, i32 -> vector<2x256xf32>
    %c18 = arith.constant 18 : index
    %c0_55 = arith.constant 0 : index
    %203 = vector.load %arg4[%c18, %c0_55] : memref<98x256xf32, #tpu.memory_space<vmem>>, vector<1x256xf32>
    %c67 = arith.constant 67 : index
    %c0_56 = arith.constant 0 : index
    %204 = vector.load %arg4[%c67, %c0_56] : memref<98x256xf32, #tpu.memory_space<vmem>>, vector<1x256xf32>
    %205 = vector.extract_strided_slice %202 {offsets = [0, 0], sizes = [1, 256], strides = [1, 1]} : vector<2x256xf32> to vector<1x256xf32>
    %206 = arith.mulf %203, %205 : vector<1x256xf32>
    %207 = arith.addf %201, %206 : vector<1x256xf32>
    %208 = vector.extract_strided_slice %202 {offsets = [1, 0], sizes = [1, 256], strides = [1, 1]} : vector<2x256xf32> to vector<1x256xf32>
    %209 = arith.mulf %204, %208 : vector<1x256xf32>
    %210 = arith.addf %207, %209 : vector<1x256xf32>
    %c14_i32 = arith.constant 14 : i32
    %211 = tpu.dynamic_rotate %38 by %c14_i32 dim 1 : vector<2x256xf32>, i32 -> vector<2x256xf32>
    %c19 = arith.constant 19 : index
    %c0_57 = arith.constant 0 : index
    %212 = vector.load %arg4[%c19, %c0_57] : memref<98x256xf32, #tpu.memory_space<vmem>>, vector<1x256xf32>
    %c68 = arith.constant 68 : index
    %c0_58 = arith.constant 0 : index
    %213 = vector.load %arg4[%c68, %c0_58] : memref<98x256xf32, #tpu.memory_space<vmem>>, vector<1x256xf32>
    %214 = vector.extract_strided_slice %211 {offsets = [0, 0], sizes = [1, 256], strides = [1, 1]} : vector<2x256xf32> to vector<1x256xf32>
    %215 = arith.mulf %212, %214 : vector<1x256xf32>
    %216 = arith.addf %210, %215 : vector<1x256xf32>
    %217 = vector.extract_strided_slice %211 {offsets = [1, 0], sizes = [1, 256], strides = [1, 1]} : vector<2x256xf32> to vector<1x256xf32>
    %218 = arith.mulf %213, %217 : vector<1x256xf32>
    %219 = arith.addf %216, %218 : vector<1x256xf32>
    %c13_i32 = arith.constant 13 : i32
    %220 = tpu.dynamic_rotate %38 by %c13_i32 dim 1 : vector<2x256xf32>, i32 -> vector<2x256xf32>
    %c20 = arith.constant 20 : index
    %c0_59 = arith.constant 0 : index
    %221 = vector.load %arg4[%c20, %c0_59] : memref<98x256xf32, #tpu.memory_space<vmem>>, vector<1x256xf32>
    %c69 = arith.constant 69 : index
    %c0_60 = arith.constant 0 : index
    %222 = vector.load %arg4[%c69, %c0_60] : memref<98x256xf32, #tpu.memory_space<vmem>>, vector<1x256xf32>
    %223 = vector.extract_strided_slice %220 {offsets = [0, 0], sizes = [1, 256], strides = [1, 1]} : vector<2x256xf32> to vector<1x256xf32>
    %224 = arith.mulf %221, %223 : vector<1x256xf32>
    %225 = arith.addf %219, %224 : vector<1x256xf32>
    %226 = vector.extract_strided_slice %220 {offsets = [1, 0], sizes = [1, 256], strides = [1, 1]} : vector<2x256xf32> to vector<1x256xf32>
    %227 = arith.mulf %222, %226 : vector<1x256xf32>
    %228 = arith.addf %225, %227 : vector<1x256xf32>
    %c3_i32 = arith.constant 3 : i32
    %229 = tpu.dynamic_rotate %38 by %c3_i32 dim 1 : vector<2x256xf32>, i32 -> vector<2x256xf32>
    %c21 = arith.constant 21 : index
    %c0_61 = arith.constant 0 : index
    %230 = vector.load %arg4[%c21, %c0_61] : memref<98x256xf32, #tpu.memory_space<vmem>>, vector<1x256xf32>
    %c70 = arith.constant 70 : index
    %c0_62 = arith.constant 0 : index
    %231 = vector.load %arg4[%c70, %c0_62] : memref<98x256xf32, #tpu.memory_space<vmem>>, vector<1x256xf32>
    %232 = vector.extract_strided_slice %229 {offsets = [0, 0], sizes = [1, 256], strides = [1, 1]} : vector<2x256xf32> to vector<1x256xf32>
    %233 = arith.mulf %230, %232 : vector<1x256xf32>
    %234 = arith.addf %228, %233 : vector<1x256xf32>
    %235 = vector.extract_strided_slice %229 {offsets = [1, 0], sizes = [1, 256], strides = [1, 1]} : vector<2x256xf32> to vector<1x256xf32>
    %236 = arith.mulf %231, %235 : vector<1x256xf32>
    %237 = arith.addf %234, %236 : vector<1x256xf32>
    %c2_i32 = arith.constant 2 : i32
    %238 = tpu.dynamic_rotate %38 by %c2_i32 dim 1 : vector<2x256xf32>, i32 -> vector<2x256xf32>
    %c22 = arith.constant 22 : index
    %c0_63 = arith.constant 0 : index
    %239 = vector.load %arg4[%c22, %c0_63] : memref<98x256xf32, #tpu.memory_space<vmem>>, vector<1x256xf32>
    %c71 = arith.constant 71 : index
    %c0_64 = arith.constant 0 : index
    %240 = vector.load %arg4[%c71, %c0_64] : memref<98x256xf32, #tpu.memory_space<vmem>>, vector<1x256xf32>
    %241 = vector.extract_strided_slice %238 {offsets = [0, 0], sizes = [1, 256], strides = [1, 1]} : vector<2x256xf32> to vector<1x256xf32>
    %242 = arith.mulf %239, %241 : vector<1x256xf32>
    %243 = arith.addf %237, %242 : vector<1x256xf32>
    %244 = vector.extract_strided_slice %238 {offsets = [1, 0], sizes = [1, 256], strides = [1, 1]} : vector<2x256xf32> to vector<1x256xf32>
    %245 = arith.mulf %240, %244 : vector<1x256xf32>
    %246 = arith.addf %243, %245 : vector<1x256xf32>
    %c1_i32 = arith.constant 1 : i32
    %247 = tpu.dynamic_rotate %38 by %c1_i32 dim 1 : vector<2x256xf32>, i32 -> vector<2x256xf32>
    %c23 = arith.constant 23 : index
    %c0_65 = arith.constant 0 : index
    %248 = vector.load %arg4[%c23, %c0_65] : memref<98x256xf32, #tpu.memory_space<vmem>>, vector<1x256xf32>
    %c72 = arith.constant 72 : index
    %c0_66 = arith.constant 0 : index
    %249 = vector.load %arg4[%c72, %c0_66] : memref<98x256xf32, #tpu.memory_space<vmem>>, vector<1x256xf32>
    %250 = vector.extract_strided_slice %247 {offsets = [0, 0], sizes = [1, 256], strides = [1, 1]} : vector<2x256xf32> to vector<1x256xf32>
    %251 = arith.mulf %248, %250 : vector<1x256xf32>
    %252 = arith.addf %246, %251 : vector<1x256xf32>
    %253 = vector.extract_strided_slice %247 {offsets = [1, 0], sizes = [1, 256], strides = [1, 1]} : vector<2x256xf32> to vector<1x256xf32>
    %254 = arith.mulf %249, %253 : vector<1x256xf32>
    %255 = arith.addf %252, %254 : vector<1x256xf32>
    %c24 = arith.constant 24 : index
    %c0_67 = arith.constant 0 : index
    %256 = vector.load %arg4[%c24, %c0_67] : memref<98x256xf32, #tpu.memory_space<vmem>>, vector<1x256xf32>
    %c73 = arith.constant 73 : index
    %c0_68 = arith.constant 0 : index
    %257 = vector.load %arg4[%c73, %c0_68] : memref<98x256xf32, #tpu.memory_space<vmem>>, vector<1x256xf32>
    %258 = vector.extract_strided_slice %38 {offsets = [0, 0], sizes = [1, 256], strides = [1, 1]} : vector<2x256xf32> to vector<1x256xf32>
    %259 = arith.mulf %256, %258 : vector<1x256xf32>
    %260 = arith.addf %255, %259 : vector<1x256xf32>
    %261 = vector.extract_strided_slice %38 {offsets = [1, 0], sizes = [1, 256], strides = [1, 1]} : vector<2x256xf32> to vector<1x256xf32>
    %262 = arith.mulf %257, %261 : vector<1x256xf32>
    %263 = arith.addf %260, %262 : vector<1x256xf32>
    %c255_i32 = arith.constant 255 : i32
    %264 = tpu.dynamic_rotate %38 by %c255_i32 dim 1 : vector<2x256xf32>, i32 -> vector<2x256xf32>
    %c25 = arith.constant 25 : index
    %c0_69 = arith.constant 0 : index
    %265 = vector.load %arg4[%c25, %c0_69] : memref<98x256xf32, #tpu.memory_space<vmem>>, vector<1x256xf32>
    %c74 = arith.constant 74 : index
    %c0_70 = arith.constant 0 : index
    %266 = vector.load %arg4[%c74, %c0_70] : memref<98x256xf32, #tpu.memory_space<vmem>>, vector<1x256xf32>
    %267 = vector.extract_strided_slice %264 {offsets = [0, 0], sizes = [1, 256], strides = [1, 1]} : vector<2x256xf32> to vector<1x256xf32>
    %268 = arith.mulf %265, %267 : vector<1x256xf32>
    %269 = arith.addf %263, %268 : vector<1x256xf32>
    %270 = vector.extract_strided_slice %264 {offsets = [1, 0], sizes = [1, 256], strides = [1, 1]} : vector<2x256xf32> to vector<1x256xf32>
    %271 = arith.mulf %266, %270 : vector<1x256xf32>
    %272 = arith.addf %269, %271 : vector<1x256xf32>
    %c254_i32 = arith.constant 254 : i32
    %273 = tpu.dynamic_rotate %38 by %c254_i32 dim 1 : vector<2x256xf32>, i32 -> vector<2x256xf32>
    %c26 = arith.constant 26 : index
    %c0_71 = arith.constant 0 : index
    %274 = vector.load %arg4[%c26, %c0_71] : memref<98x256xf32, #tpu.memory_space<vmem>>, vector<1x256xf32>
    %c75 = arith.constant 75 : index
    %c0_72 = arith.constant 0 : index
    %275 = vector.load %arg4[%c75, %c0_72] : memref<98x256xf32, #tpu.memory_space<vmem>>, vector<1x256xf32>
    %276 = vector.extract_strided_slice %273 {offsets = [0, 0], sizes = [1, 256], strides = [1, 1]} : vector<2x256xf32> to vector<1x256xf32>
    %277 = arith.mulf %274, %276 : vector<1x256xf32>
    %278 = arith.addf %272, %277 : vector<1x256xf32>
    %279 = vector.extract_strided_slice %273 {offsets = [1, 0], sizes = [1, 256], strides = [1, 1]} : vector<2x256xf32> to vector<1x256xf32>
    %280 = arith.mulf %275, %279 : vector<1x256xf32>
    %281 = arith.addf %278, %280 : vector<1x256xf32>
    %c253_i32 = arith.constant 253 : i32
    %282 = tpu.dynamic_rotate %38 by %c253_i32 dim 1 : vector<2x256xf32>, i32 -> vector<2x256xf32>
    %c27 = arith.constant 27 : index
    %c0_73 = arith.constant 0 : index
    %283 = vector.load %arg4[%c27, %c0_73] : memref<98x256xf32, #tpu.memory_space<vmem>>, vector<1x256xf32>
    %c76 = arith.constant 76 : index
    %c0_74 = arith.constant 0 : index
    %284 = vector.load %arg4[%c76, %c0_74] : memref<98x256xf32, #tpu.memory_space<vmem>>, vector<1x256xf32>
    %285 = vector.extract_strided_slice %282 {offsets = [0, 0], sizes = [1, 256], strides = [1, 1]} : vector<2x256xf32> to vector<1x256xf32>
    %286 = arith.mulf %283, %285 : vector<1x256xf32>
    %287 = arith.addf %281, %286 : vector<1x256xf32>
    %288 = vector.extract_strided_slice %282 {offsets = [1, 0], sizes = [1, 256], strides = [1, 1]} : vector<2x256xf32> to vector<1x256xf32>
    %289 = arith.mulf %284, %288 : vector<1x256xf32>
    %290 = arith.addf %287, %289 : vector<1x256xf32>
    %c243_i32 = arith.constant 243 : i32
    %291 = tpu.dynamic_rotate %38 by %c243_i32 dim 1 : vector<2x256xf32>, i32 -> vector<2x256xf32>
    %c28 = arith.constant 28 : index
    %c0_75 = arith.constant 0 : index
    %292 = vector.load %arg4[%c28, %c0_75] : memref<98x256xf32, #tpu.memory_space<vmem>>, vector<1x256xf32>
    %c77 = arith.constant 77 : index
    %c0_76 = arith.constant 0 : index
    %293 = vector.load %arg4[%c77, %c0_76] : memref<98x256xf32, #tpu.memory_space<vmem>>, vector<1x256xf32>
    %294 = vector.extract_strided_slice %291 {offsets = [0, 0], sizes = [1, 256], strides = [1, 1]} : vector<2x256xf32> to vector<1x256xf32>
    %295 = arith.mulf %292, %294 : vector<1x256xf32>
    %296 = arith.addf %290, %295 : vector<1x256xf32>
    %297 = vector.extract_strided_slice %291 {offsets = [1, 0], sizes = [1, 256], strides = [1, 1]} : vector<2x256xf32> to vector<1x256xf32>
    %298 = arith.mulf %293, %297 : vector<1x256xf32>
    %299 = arith.addf %296, %298 : vector<1x256xf32>
    %c242_i32 = arith.constant 242 : i32
    %300 = tpu.dynamic_rotate %38 by %c242_i32 dim 1 : vector<2x256xf32>, i32 -> vector<2x256xf32>
    %c29 = arith.constant 29 : index
    %c0_77 = arith.constant 0 : index
    %301 = vector.load %arg4[%c29, %c0_77] : memref<98x256xf32, #tpu.memory_space<vmem>>, vector<1x256xf32>
    %c78 = arith.constant 78 : index
    %c0_78 = arith.constant 0 : index
    %302 = vector.load %arg4[%c78, %c0_78] : memref<98x256xf32, #tpu.memory_space<vmem>>, vector<1x256xf32>
    %303 = vector.extract_strided_slice %300 {offsets = [0, 0], sizes = [1, 256], strides = [1, 1]} : vector<2x256xf32> to vector<1x256xf32>
    %304 = arith.mulf %301, %303 : vector<1x256xf32>
    %305 = arith.addf %299, %304 : vector<1x256xf32>
    %306 = vector.extract_strided_slice %300 {offsets = [1, 0], sizes = [1, 256], strides = [1, 1]} : vector<2x256xf32> to vector<1x256xf32>
    %307 = arith.mulf %302, %306 : vector<1x256xf32>
    %308 = arith.addf %305, %307 : vector<1x256xf32>
    %c241_i32 = arith.constant 241 : i32
    %309 = tpu.dynamic_rotate %38 by %c241_i32 dim 1 : vector<2x256xf32>, i32 -> vector<2x256xf32>
    %c30 = arith.constant 30 : index
    %c0_79 = arith.constant 0 : index
    %310 = vector.load %arg4[%c30, %c0_79] : memref<98x256xf32, #tpu.memory_space<vmem>>, vector<1x256xf32>
    %c79 = arith.constant 79 : index
    %c0_80 = arith.constant 0 : index
    %311 = vector.load %arg4[%c79, %c0_80] : memref<98x256xf32, #tpu.memory_space<vmem>>, vector<1x256xf32>
    %312 = vector.extract_strided_slice %309 {offsets = [0, 0], sizes = [1, 256], strides = [1, 1]} : vector<2x256xf32> to vector<1x256xf32>
    %313 = arith.mulf %310, %312 : vector<1x256xf32>
    %314 = arith.addf %308, %313 : vector<1x256xf32>
    %315 = vector.extract_strided_slice %309 {offsets = [1, 0], sizes = [1, 256], strides = [1, 1]} : vector<2x256xf32> to vector<1x256xf32>
    %316 = arith.mulf %311, %315 : vector<1x256xf32>
    %317 = arith.addf %314, %316 : vector<1x256xf32>
    %c240_i32 = arith.constant 240 : i32
    %318 = tpu.dynamic_rotate %38 by %c240_i32 dim 1 : vector<2x256xf32>, i32 -> vector<2x256xf32>
    %c31 = arith.constant 31 : index
    %c0_81 = arith.constant 0 : index
    %319 = vector.load %arg4[%c31, %c0_81] : memref<98x256xf32, #tpu.memory_space<vmem>>, vector<1x256xf32>
    %c80 = arith.constant 80 : index
    %c0_82 = arith.constant 0 : index
    %320 = vector.load %arg4[%c80, %c0_82] : memref<98x256xf32, #tpu.memory_space<vmem>>, vector<1x256xf32>
    %321 = vector.extract_strided_slice %318 {offsets = [0, 0], sizes = [1, 256], strides = [1, 1]} : vector<2x256xf32> to vector<1x256xf32>
    %322 = arith.mulf %319, %321 : vector<1x256xf32>
    %323 = arith.addf %317, %322 : vector<1x256xf32>
    %324 = vector.extract_strided_slice %318 {offsets = [1, 0], sizes = [1, 256], strides = [1, 1]} : vector<2x256xf32> to vector<1x256xf32>
    %325 = arith.mulf %320, %324 : vector<1x256xf32>
    %326 = arith.addf %323, %325 : vector<1x256xf32>
    %c239_i32 = arith.constant 239 : i32
    %327 = tpu.dynamic_rotate %38 by %c239_i32 dim 1 : vector<2x256xf32>, i32 -> vector<2x256xf32>
    %c32 = arith.constant 32 : index
    %c0_83 = arith.constant 0 : index
    %328 = vector.load %arg4[%c32, %c0_83] : memref<98x256xf32, #tpu.memory_space<vmem>>, vector<1x256xf32>
    %c81 = arith.constant 81 : index
    %c0_84 = arith.constant 0 : index
    %329 = vector.load %arg4[%c81, %c0_84] : memref<98x256xf32, #tpu.memory_space<vmem>>, vector<1x256xf32>
    %330 = vector.extract_strided_slice %327 {offsets = [0, 0], sizes = [1, 256], strides = [1, 1]} : vector<2x256xf32> to vector<1x256xf32>
    %331 = arith.mulf %328, %330 : vector<1x256xf32>
    %332 = arith.addf %326, %331 : vector<1x256xf32>
    %333 = vector.extract_strided_slice %327 {offsets = [1, 0], sizes = [1, 256], strides = [1, 1]} : vector<2x256xf32> to vector<1x256xf32>
    %334 = arith.mulf %329, %333 : vector<1x256xf32>
    %335 = arith.addf %332, %334 : vector<1x256xf32>
    %c238_i32 = arith.constant 238 : i32
    %336 = tpu.dynamic_rotate %38 by %c238_i32 dim 1 : vector<2x256xf32>, i32 -> vector<2x256xf32>
    %c33 = arith.constant 33 : index
    %c0_85 = arith.constant 0 : index
    %337 = vector.load %arg4[%c33, %c0_85] : memref<98x256xf32, #tpu.memory_space<vmem>>, vector<1x256xf32>
    %c82 = arith.constant 82 : index
    %c0_86 = arith.constant 0 : index
    %338 = vector.load %arg4[%c82, %c0_86] : memref<98x256xf32, #tpu.memory_space<vmem>>, vector<1x256xf32>
    %339 = vector.extract_strided_slice %336 {offsets = [0, 0], sizes = [1, 256], strides = [1, 1]} : vector<2x256xf32> to vector<1x256xf32>
    %340 = arith.mulf %337, %339 : vector<1x256xf32>
    %341 = arith.addf %335, %340 : vector<1x256xf32>
    %342 = vector.extract_strided_slice %336 {offsets = [1, 0], sizes = [1, 256], strides = [1, 1]} : vector<2x256xf32> to vector<1x256xf32>
    %343 = arith.mulf %338, %342 : vector<1x256xf32>
    %344 = arith.addf %341, %343 : vector<1x256xf32>
    %c237_i32 = arith.constant 237 : i32
    %345 = tpu.dynamic_rotate %38 by %c237_i32 dim 1 : vector<2x256xf32>, i32 -> vector<2x256xf32>
    %c34 = arith.constant 34 : index
    %c0_87 = arith.constant 0 : index
    %346 = vector.load %arg4[%c34, %c0_87] : memref<98x256xf32, #tpu.memory_space<vmem>>, vector<1x256xf32>
    %c83 = arith.constant 83 : index
    %c0_88 = arith.constant 0 : index
    %347 = vector.load %arg4[%c83, %c0_88] : memref<98x256xf32, #tpu.memory_space<vmem>>, vector<1x256xf32>
    %348 = vector.extract_strided_slice %345 {offsets = [0, 0], sizes = [1, 256], strides = [1, 1]} : vector<2x256xf32> to vector<1x256xf32>
    %349 = arith.mulf %346, %348 : vector<1x256xf32>
    %350 = arith.addf %344, %349 : vector<1x256xf32>
    %351 = vector.extract_strided_slice %345 {offsets = [1, 0], sizes = [1, 256], strides = [1, 1]} : vector<2x256xf32> to vector<1x256xf32>
    %352 = arith.mulf %347, %351 : vector<1x256xf32>
    %353 = arith.addf %350, %352 : vector<1x256xf32>
    %c227_i32 = arith.constant 227 : i32
    %354 = tpu.dynamic_rotate %38 by %c227_i32 dim 1 : vector<2x256xf32>, i32 -> vector<2x256xf32>
    %c35 = arith.constant 35 : index
    %c0_89 = arith.constant 0 : index
    %355 = vector.load %arg4[%c35, %c0_89] : memref<98x256xf32, #tpu.memory_space<vmem>>, vector<1x256xf32>
    %c84 = arith.constant 84 : index
    %c0_90 = arith.constant 0 : index
    %356 = vector.load %arg4[%c84, %c0_90] : memref<98x256xf32, #tpu.memory_space<vmem>>, vector<1x256xf32>
    %357 = vector.extract_strided_slice %354 {offsets = [0, 0], sizes = [1, 256], strides = [1, 1]} : vector<2x256xf32> to vector<1x256xf32>
    %358 = arith.mulf %355, %357 : vector<1x256xf32>
    %359 = arith.addf %353, %358 : vector<1x256xf32>
    %360 = vector.extract_strided_slice %354 {offsets = [1, 0], sizes = [1, 256], strides = [1, 1]} : vector<2x256xf32> to vector<1x256xf32>
    %361 = arith.mulf %356, %360 : vector<1x256xf32>
    %362 = arith.addf %359, %361 : vector<1x256xf32>
    %c226_i32 = arith.constant 226 : i32
    %363 = tpu.dynamic_rotate %38 by %c226_i32 dim 1 : vector<2x256xf32>, i32 -> vector<2x256xf32>
    %c36 = arith.constant 36 : index
    %c0_91 = arith.constant 0 : index
    %364 = vector.load %arg4[%c36, %c0_91] : memref<98x256xf32, #tpu.memory_space<vmem>>, vector<1x256xf32>
    %c85 = arith.constant 85 : index
    %c0_92 = arith.constant 0 : index
    %365 = vector.load %arg4[%c85, %c0_92] : memref<98x256xf32, #tpu.memory_space<vmem>>, vector<1x256xf32>
    %366 = vector.extract_strided_slice %363 {offsets = [0, 0], sizes = [1, 256], strides = [1, 1]} : vector<2x256xf32> to vector<1x256xf32>
    %367 = arith.mulf %364, %366 : vector<1x256xf32>
    %368 = arith.addf %362, %367 : vector<1x256xf32>
    %369 = vector.extract_strided_slice %363 {offsets = [1, 0], sizes = [1, 256], strides = [1, 1]} : vector<2x256xf32> to vector<1x256xf32>
    %370 = arith.mulf %365, %369 : vector<1x256xf32>
    %371 = arith.addf %368, %370 : vector<1x256xf32>
    %c225_i32 = arith.constant 225 : i32
    %372 = tpu.dynamic_rotate %38 by %c225_i32 dim 1 : vector<2x256xf32>, i32 -> vector<2x256xf32>
    %c37 = arith.constant 37 : index
    %c0_93 = arith.constant 0 : index
    %373 = vector.load %arg4[%c37, %c0_93] : memref<98x256xf32, #tpu.memory_space<vmem>>, vector<1x256xf32>
    %c86 = arith.constant 86 : index
    %c0_94 = arith.constant 0 : index
    %374 = vector.load %arg4[%c86, %c0_94] : memref<98x256xf32, #tpu.memory_space<vmem>>, vector<1x256xf32>
    %375 = vector.extract_strided_slice %372 {offsets = [0, 0], sizes = [1, 256], strides = [1, 1]} : vector<2x256xf32> to vector<1x256xf32>
    %376 = arith.mulf %373, %375 : vector<1x256xf32>
    %377 = arith.addf %371, %376 : vector<1x256xf32>
    %378 = vector.extract_strided_slice %372 {offsets = [1, 0], sizes = [1, 256], strides = [1, 1]} : vector<2x256xf32> to vector<1x256xf32>
    %379 = arith.mulf %374, %378 : vector<1x256xf32>
    %380 = arith.addf %377, %379 : vector<1x256xf32>
    %c224_i32 = arith.constant 224 : i32
    %381 = tpu.dynamic_rotate %38 by %c224_i32 dim 1 : vector<2x256xf32>, i32 -> vector<2x256xf32>
    %c38 = arith.constant 38 : index
    %c0_95 = arith.constant 0 : index
    %382 = vector.load %arg4[%c38, %c0_95] : memref<98x256xf32, #tpu.memory_space<vmem>>, vector<1x256xf32>
    %c87 = arith.constant 87 : index
    %c0_96 = arith.constant 0 : index
    %383 = vector.load %arg4[%c87, %c0_96] : memref<98x256xf32, #tpu.memory_space<vmem>>, vector<1x256xf32>
    %384 = vector.extract_strided_slice %381 {offsets = [0, 0], sizes = [1, 256], strides = [1, 1]} : vector<2x256xf32> to vector<1x256xf32>
    %385 = arith.mulf %382, %384 : vector<1x256xf32>
    %386 = arith.addf %380, %385 : vector<1x256xf32>
    %387 = vector.extract_strided_slice %381 {offsets = [1, 0], sizes = [1, 256], strides = [1, 1]} : vector<2x256xf32> to vector<1x256xf32>
    %388 = arith.mulf %383, %387 : vector<1x256xf32>
    %389 = arith.addf %386, %388 : vector<1x256xf32>
    %c223_i32 = arith.constant 223 : i32
    %390 = tpu.dynamic_rotate %38 by %c223_i32 dim 1 : vector<2x256xf32>, i32 -> vector<2x256xf32>
    %c39 = arith.constant 39 : index
    %c0_97 = arith.constant 0 : index
    %391 = vector.load %arg4[%c39, %c0_97] : memref<98x256xf32, #tpu.memory_space<vmem>>, vector<1x256xf32>
    %c88 = arith.constant 88 : index
    %c0_98 = arith.constant 0 : index
    %392 = vector.load %arg4[%c88, %c0_98] : memref<98x256xf32, #tpu.memory_space<vmem>>, vector<1x256xf32>
    %393 = vector.extract_strided_slice %390 {offsets = [0, 0], sizes = [1, 256], strides = [1, 1]} : vector<2x256xf32> to vector<1x256xf32>
    %394 = arith.mulf %391, %393 : vector<1x256xf32>
    %395 = arith.addf %389, %394 : vector<1x256xf32>
    %396 = vector.extract_strided_slice %390 {offsets = [1, 0], sizes = [1, 256], strides = [1, 1]} : vector<2x256xf32> to vector<1x256xf32>
    %397 = arith.mulf %392, %396 : vector<1x256xf32>
    %398 = arith.addf %395, %397 : vector<1x256xf32>
    %c222_i32 = arith.constant 222 : i32
    %399 = tpu.dynamic_rotate %38 by %c222_i32 dim 1 : vector<2x256xf32>, i32 -> vector<2x256xf32>
    %c40 = arith.constant 40 : index
    %c0_99 = arith.constant 0 : index
    %400 = vector.load %arg4[%c40, %c0_99] : memref<98x256xf32, #tpu.memory_space<vmem>>, vector<1x256xf32>
    %c89 = arith.constant 89 : index
    %c0_100 = arith.constant 0 : index
    %401 = vector.load %arg4[%c89, %c0_100] : memref<98x256xf32, #tpu.memory_space<vmem>>, vector<1x256xf32>
    %402 = vector.extract_strided_slice %399 {offsets = [0, 0], sizes = [1, 256], strides = [1, 1]} : vector<2x256xf32> to vector<1x256xf32>
    %403 = arith.mulf %400, %402 : vector<1x256xf32>
    %404 = arith.addf %398, %403 : vector<1x256xf32>
    %405 = vector.extract_strided_slice %399 {offsets = [1, 0], sizes = [1, 256], strides = [1, 1]} : vector<2x256xf32> to vector<1x256xf32>
    %406 = arith.mulf %401, %405 : vector<1x256xf32>
    %407 = arith.addf %404, %406 : vector<1x256xf32>
    %c221_i32 = arith.constant 221 : i32
    %408 = tpu.dynamic_rotate %38 by %c221_i32 dim 1 : vector<2x256xf32>, i32 -> vector<2x256xf32>
    %c41 = arith.constant 41 : index
    %c0_101 = arith.constant 0 : index
    %409 = vector.load %arg4[%c41, %c0_101] : memref<98x256xf32, #tpu.memory_space<vmem>>, vector<1x256xf32>
    %c90 = arith.constant 90 : index
    %c0_102 = arith.constant 0 : index
    %410 = vector.load %arg4[%c90, %c0_102] : memref<98x256xf32, #tpu.memory_space<vmem>>, vector<1x256xf32>
    %411 = vector.extract_strided_slice %408 {offsets = [0, 0], sizes = [1, 256], strides = [1, 1]} : vector<2x256xf32> to vector<1x256xf32>
    %412 = arith.mulf %409, %411 : vector<1x256xf32>
    %413 = arith.addf %407, %412 : vector<1x256xf32>
    %414 = vector.extract_strided_slice %408 {offsets = [1, 0], sizes = [1, 256], strides = [1, 1]} : vector<2x256xf32> to vector<1x256xf32>
    %415 = arith.mulf %410, %414 : vector<1x256xf32>
    %416 = arith.addf %413, %415 : vector<1x256xf32>
    %c211_i32 = arith.constant 211 : i32
    %417 = tpu.dynamic_rotate %38 by %c211_i32 dim 1 : vector<2x256xf32>, i32 -> vector<2x256xf32>
    %c42 = arith.constant 42 : index
    %c0_103 = arith.constant 0 : index
    %418 = vector.load %arg4[%c42, %c0_103] : memref<98x256xf32, #tpu.memory_space<vmem>>, vector<1x256xf32>
    %c91 = arith.constant 91 : index
    %c0_104 = arith.constant 0 : index
    %419 = vector.load %arg4[%c91, %c0_104] : memref<98x256xf32, #tpu.memory_space<vmem>>, vector<1x256xf32>
    %420 = vector.extract_strided_slice %417 {offsets = [0, 0], sizes = [1, 256], strides = [1, 1]} : vector<2x256xf32> to vector<1x256xf32>
    %421 = arith.mulf %418, %420 : vector<1x256xf32>
    %422 = arith.addf %416, %421 : vector<1x256xf32>
    %423 = vector.extract_strided_slice %417 {offsets = [1, 0], sizes = [1, 256], strides = [1, 1]} : vector<2x256xf32> to vector<1x256xf32>
    %424 = arith.mulf %419, %423 : vector<1x256xf32>
    %425 = arith.addf %422, %424 : vector<1x256xf32>
    %c210_i32 = arith.constant 210 : i32
    %426 = tpu.dynamic_rotate %38 by %c210_i32 dim 1 : vector<2x256xf32>, i32 -> vector<2x256xf32>
    %c43 = arith.constant 43 : index
    %c0_105 = arith.constant 0 : index
    %427 = vector.load %arg4[%c43, %c0_105] : memref<98x256xf32, #tpu.memory_space<vmem>>, vector<1x256xf32>
    %c92 = arith.constant 92 : index
    %c0_106 = arith.constant 0 : index
    %428 = vector.load %arg4[%c92, %c0_106] : memref<98x256xf32, #tpu.memory_space<vmem>>, vector<1x256xf32>
    %429 = vector.extract_strided_slice %426 {offsets = [0, 0], sizes = [1, 256], strides = [1, 1]} : vector<2x256xf32> to vector<1x256xf32>
    %430 = arith.mulf %427, %429 : vector<1x256xf32>
    %431 = arith.addf %425, %430 : vector<1x256xf32>
    %432 = vector.extract_strided_slice %426 {offsets = [1, 0], sizes = [1, 256], strides = [1, 1]} : vector<2x256xf32> to vector<1x256xf32>
    %433 = arith.mulf %428, %432 : vector<1x256xf32>
    %434 = arith.addf %431, %433 : vector<1x256xf32>
    %c209_i32 = arith.constant 209 : i32
    %435 = tpu.dynamic_rotate %38 by %c209_i32 dim 1 : vector<2x256xf32>, i32 -> vector<2x256xf32>
    %c44 = arith.constant 44 : index
    %c0_107 = arith.constant 0 : index
    %436 = vector.load %arg4[%c44, %c0_107] : memref<98x256xf32, #tpu.memory_space<vmem>>, vector<1x256xf32>
    %c93 = arith.constant 93 : index
    %c0_108 = arith.constant 0 : index
    %437 = vector.load %arg4[%c93, %c0_108] : memref<98x256xf32, #tpu.memory_space<vmem>>, vector<1x256xf32>
    %438 = vector.extract_strided_slice %435 {offsets = [0, 0], sizes = [1, 256], strides = [1, 1]} : vector<2x256xf32> to vector<1x256xf32>
    %439 = arith.mulf %436, %438 : vector<1x256xf32>
    %440 = arith.addf %434, %439 : vector<1x256xf32>
    %441 = vector.extract_strided_slice %435 {offsets = [1, 0], sizes = [1, 256], strides = [1, 1]} : vector<2x256xf32> to vector<1x256xf32>
    %442 = arith.mulf %437, %441 : vector<1x256xf32>
    %443 = arith.addf %440, %442 : vector<1x256xf32>
    %c208_i32 = arith.constant 208 : i32
    %444 = tpu.dynamic_rotate %38 by %c208_i32 dim 1 : vector<2x256xf32>, i32 -> vector<2x256xf32>
    %c45 = arith.constant 45 : index
    %c0_109 = arith.constant 0 : index
    %445 = vector.load %arg4[%c45, %c0_109] : memref<98x256xf32, #tpu.memory_space<vmem>>, vector<1x256xf32>
    %c94 = arith.constant 94 : index
    %c0_110 = arith.constant 0 : index
    %446 = vector.load %arg4[%c94, %c0_110] : memref<98x256xf32, #tpu.memory_space<vmem>>, vector<1x256xf32>
    %447 = vector.extract_strided_slice %444 {offsets = [0, 0], sizes = [1, 256], strides = [1, 1]} : vector<2x256xf32> to vector<1x256xf32>
    %448 = arith.mulf %445, %447 : vector<1x256xf32>
    %449 = arith.addf %443, %448 : vector<1x256xf32>
    %450 = vector.extract_strided_slice %444 {offsets = [1, 0], sizes = [1, 256], strides = [1, 1]} : vector<2x256xf32> to vector<1x256xf32>
    %451 = arith.mulf %446, %450 : vector<1x256xf32>
    %452 = arith.addf %449, %451 : vector<1x256xf32>
    %c207_i32 = arith.constant 207 : i32
    %453 = tpu.dynamic_rotate %38 by %c207_i32 dim 1 : vector<2x256xf32>, i32 -> vector<2x256xf32>
    %c46 = arith.constant 46 : index
    %c0_111 = arith.constant 0 : index
    %454 = vector.load %arg4[%c46, %c0_111] : memref<98x256xf32, #tpu.memory_space<vmem>>, vector<1x256xf32>
    %c95 = arith.constant 95 : index
    %c0_112 = arith.constant 0 : index
    %455 = vector.load %arg4[%c95, %c0_112] : memref<98x256xf32, #tpu.memory_space<vmem>>, vector<1x256xf32>
    %456 = vector.extract_strided_slice %453 {offsets = [0, 0], sizes = [1, 256], strides = [1, 1]} : vector<2x256xf32> to vector<1x256xf32>
    %457 = arith.mulf %454, %456 : vector<1x256xf32>
    %458 = arith.addf %452, %457 : vector<1x256xf32>
    %459 = vector.extract_strided_slice %453 {offsets = [1, 0], sizes = [1, 256], strides = [1, 1]} : vector<2x256xf32> to vector<1x256xf32>
    %460 = arith.mulf %455, %459 : vector<1x256xf32>
    %461 = arith.addf %458, %460 : vector<1x256xf32>
    %c206_i32 = arith.constant 206 : i32
    %462 = tpu.dynamic_rotate %38 by %c206_i32 dim 1 : vector<2x256xf32>, i32 -> vector<2x256xf32>
    %c47 = arith.constant 47 : index
    %c0_113 = arith.constant 0 : index
    %463 = vector.load %arg4[%c47, %c0_113] : memref<98x256xf32, #tpu.memory_space<vmem>>, vector<1x256xf32>
    %c96 = arith.constant 96 : index
    %c0_114 = arith.constant 0 : index
    %464 = vector.load %arg4[%c96, %c0_114] : memref<98x256xf32, #tpu.memory_space<vmem>>, vector<1x256xf32>
    %465 = vector.extract_strided_slice %462 {offsets = [0, 0], sizes = [1, 256], strides = [1, 1]} : vector<2x256xf32> to vector<1x256xf32>
    %466 = arith.mulf %463, %465 : vector<1x256xf32>
    %467 = arith.addf %461, %466 : vector<1x256xf32>
    %468 = vector.extract_strided_slice %462 {offsets = [1, 0], sizes = [1, 256], strides = [1, 1]} : vector<2x256xf32> to vector<1x256xf32>
    %469 = arith.mulf %464, %468 : vector<1x256xf32>
    %470 = arith.addf %467, %469 : vector<1x256xf32>
    %c205_i32 = arith.constant 205 : i32
    %471 = tpu.dynamic_rotate %38 by %c205_i32 dim 1 : vector<2x256xf32>, i32 -> vector<2x256xf32>
    %c48 = arith.constant 48 : index
    %c0_115 = arith.constant 0 : index
    %472 = vector.load %arg4[%c48, %c0_115] : memref<98x256xf32, #tpu.memory_space<vmem>>, vector<1x256xf32>
    %c97 = arith.constant 97 : index
    %c0_116 = arith.constant 0 : index
    %473 = vector.load %arg4[%c97, %c0_116] : memref<98x256xf32, #tpu.memory_space<vmem>>, vector<1x256xf32>
    %474 = vector.extract_strided_slice %471 {offsets = [0, 0], sizes = [1, 256], strides = [1, 1]} : vector<2x256xf32> to vector<1x256xf32>
    %475 = arith.mulf %472, %474 : vector<1x256xf32>
    %476 = arith.addf %470, %475 : vector<1x256xf32>
    %477 = vector.extract_strided_slice %471 {offsets = [1, 0], sizes = [1, 256], strides = [1, 1]} : vector<2x256xf32> to vector<1x256xf32>
    %478 = arith.mulf %473, %477 : vector<1x256xf32>
    %479 = arith.addf %476, %478 : vector<1x256xf32>
    %480 = arith.negf %479 : vector<1x256xf32>
    %481 = math.exp %480 : vector<1x256xf32>
    %cst_117 = arith.constant 1.000000e+00 : f32
    %482 = vector.broadcast %cst_117 : f32 to vector<1x256xf32>
    %483 = arith.addf %482, %481 : vector<1x256xf32>
    %484 = arith.divf %482, %483 : vector<1x256xf32>
    %485 = vector.shape_cast %484 : vector<1x256xf32> to vector<1x1x256xf32>
    %486 = vector.broadcast %33 : vector<1x8x1xf32> to vector<1x8x256xf32>
    %487 = vector.broadcast %485 : vector<1x1x256xf32> to vector<1x8x256xf32>
    %488 = arith.addf %486, %487 : vector<1x8x256xf32>
    %489 = arith.mulf %488, %0 : vector<1x8x256xf32>
    %c0_118 = arith.constant 0 : index
    %c0_119 = arith.constant 0 : index
    %c0_120 = arith.constant 0 : index
    %490 = vector.load %arg5[%c0_118, %c0_119, %c0_120] : memref<1x8x256xf32, #tpu.memory_space<vmem>>, vector<1x8x256xf32>
    tpu.vector_store %arg5[%c0_118, %c0_119, %c0_120], %489 {strides = array<i32>} : memref<1x8x256xf32, #tpu.memory_space<vmem>>, vector<1x8x256xf32>,
    return
  }
  func.func @transform_0(%arg0: i32) -> (i32, i32, i32) {
    %c0_i32 = arith.constant 0 : i32
    %c0_i32_0 = arith.constant 0 : i32
    %c0_i32_1 = arith.constant 0 : i32
    return %arg0, %c0_i32, %c0_i32_0 : i32, i32, i32
  }
  func.func @transform_1(%arg0: i32) -> (i32, i32) {
    %c0_i32 = arith.constant 0 : i32
    %c0_i32_0 = arith.constant 0 : i32
    %c0_i32_1 = arith.constant 0 : i32
    return %c0_i32, %c0_i32_0 : i32, i32
  }
  func.func @transform_2(%arg0: i32) -> (i32, i32) {
    %c0_i32 = arith.constant 0 : i32
    %c0_i32_0 = arith.constant 0 : i32
    %c0_i32_1 = arith.constant 0 : i32
    return %c0_i32, %c0_i32_0 : i32, i32
  }
  func.func @transform_3(%arg0: i32) -> (i32, i32) {
    %c0_i32 = arith.constant 0 : i32
    %c0_i32_0 = arith.constant 0 : i32
    %c0_i32_1 = arith.constant 0 : i32
    return %c0_i32, %c0_i32_0 : i32, i32
  }
  func.func @transform_4(%arg0: i32) -> (i32, i32, i32) {
    %c0_i32 = arith.constant 0 : i32
    %c0_i32_0 = arith.constant 0 : i32
    %c0_i32_1 = arith.constant 0 : i32
    return %arg0, %c0_i32, %c0_i32_0 : i32, i32, i32
  }
}

</mosaic_0001>

<bundles_post_ra>
// kernel: tpu_custom_call.1
= control target key start
LH: loop header
LB: loop body
LE: loop exit
PB: predicated region body
PF: predicated region fallthrough
CT: control target
= control target key end

     0   :  { %9 = vsyncpa [#allocation3], 0  ;;  %s3393_s0 = inlined_call_operand.hbm [shape: f32[2,8,256], index: 0, kind: input, shape index: {}]   ;;  %s3394_s1 = inlined_call_operand.vmem [shape: f32[8,2], index: 1, kind: input, shape index: {}]   ;;  %s3395_s2 = inlined_call_operand.vmem [shape: f32[8,2], index: 2, kind: input, shape index: {}]   ;;  %s3396_s3 = inlined_call_operand.hbm [shape: f32[98,256], index: 3, kind: input, shape index: {}]   ;;  %s3397_s4 = inlined_call_operand.hbm [shape: f32[2,8,256], index: 4, kind: output, shape index: {}]  }
   0x1   :  { %11 = vsyncpa [#allocation3 + $0x1], 0 }
   0x2   :  { %12 = vsyncpa [#allocation6], 0 }
   0x3   :  { %13 = vsyncpa [#allocation4], 0 }
   0x4   :  { %15 = vsyncpa [#allocation4 + $0x1], 0  ;;  %s2818_s15 = smov 0   ;;  %s2820_s16 = smov 0  }
   0x5   :  { %s2822_s17 = smov 0   ;;  %s2824_s18 = smov 0  }
   0x6 LB: > { %s2839_s19 = sadd.s32 4294967295, %s2737_s18   ;;  %s2471_s20 = sadd.s32 4294967294, %s2737_s18   ;;  %s2737_s18 = sphi %s2824_s18, %s3417_s18   ;;  %s2733_s17 = sphi %s2822_s17, %s3416_s17   ;;  %s2729_s16 = sphi %s2820_s16, %s3415_s16   ;;  %s2725_s15 = sphi %s2818_s15, %s3414_s15  }
   0x7   : > { %p41_p0 = scmp.ne.s32.totalorder %s2729_s16, %s2725_s15  ;;  %p3398_p1 = scmp.eq.s32.totalorder %s2839_s19, 0 }
   0x8   : > { %p134_p3 = scmp.eq.s32.totalorder %s2471_s20, 1  ;;  %p2472_p5 = scmp.ge.s32.totalorder %s2737_s18, 1 }
   0x9   : > { %p2848_p4 = por %p3398_p1, %p41_p0  ;;  %p141_p7 = scmp.lt.s32.totalorder %s2737_s18, 3 }
   0xa   : > { %p2853_p6 = por %p134_p3, %p41_p0  ;;  %s2739_s24 = smov [#allocation5]  }
   0xb   : > { %s3401_s21 = scalar_select %p2848_p4, 1, 0 }
   0xc   : > { %s3402_s22 = scalar_select %p2853_p6, 1, 0 }
   0xd   : > { %p2858_p8 = pnand %p2472_p5, %p141_p7  ;;  %s159_s25 = sshll.u32 %s2739_s24, 4  ;;  %s2862_s25 = int_to_ptr.vmem [resolvable:$true] %s159_s25 }
   0xe   : > { %s2874_s27 = sadd.s32 1, %s2737_s18   ;;  %s28_s28 = sadd.s32 1, %s2733_s17 }
   0xf   : > { %s3403_s23 = scalar_select %p2858_p8, 1, 0 }
  0x10   : > { %p2499_p9 = pneg %p2858_p8  ;;  %s25_s29 = ssub.s32 %s2737_s18, %s2874_s27 }
  0x11   : > { %s2609_s6 = scalar_lea.hbm %s3396_s3, 3328 }
  0x12   : > { %p2869_p11 = pnand %p2499_p9, %p3398_p1  ;;  %p2610_p12 = scmp.ne.s32.totalorder %s3396_s3, %s2609_s6 }
  0x13   : > { %p2616_p5 = scmp.lt.u32.totalorder %s2609_s6, %s3396_s3 }
  0x14   : > { %p2611_p13 = pneg %p2869_p11 }
  0x16   : > { %p2612_p0 = pnand %p2611_p13, %p2610_p12 }
  0x18   : > { %p2613_p3 = pneg %p2612_p0 }
  0x1a   : > { %p2618_p7 = pnand %p2616_p5, %p2613_p3 }
  0x1c   : > { %2621 = shalt.err (!%p2618_p7)
}
  0x1d   : > { %s2622_s11 = scalar_lea.vmem %s2862_s25, 3328  ;;  %p2630_p2 = scmp.lt.s32.totalorder %s2862_s25, %s2862_s25 }
  0x1e   : > { %p2623_p9 = scmp.ne.s32.totalorder %s2862_s25, %s2622_s11  ;;  %p2631_p6 = scmp.lt.s32.totalorder %s2622_s11, %s2622_s11 }
  0x20   : > { %p2625_p10 = pnand %p2623_p9, %p2611_p13  ;;  %p2632_p4 = por %p2631_p6, %p2630_p2 }
  0x22   : > { %p2626_p1 = pneg %p2625_p10 }
  0x24   : > { %p2633_p8 = pnand %p2632_p4, %p2626_p1 }
  0x26   : > { %2636 = shalt.err (!%p2633_p8)
}
  0x27   : > { %s2740_s12 = smov 256   ;;  %s2741_s13 = smov 16  }
  0x28   : > { %2502 = dma.hbm_to_vmem [thread:$0]  (!%p2869_p11), %s3396_s3, 3328, %s2862_s25, [#allocation6], %s2740_s12, %s2740_s12, %s2741_s13  }
  0x29   : > { %p26_p2 = scmp.eq.s32.totalorder %s25_s29, 0  ;;  %p35_p1 = scmp.ne.s32.totalorder %s2733_s17, %s2729_s16 }
  0x2a   : > { %p36_p4 = scmp.eq.s32.totalorder %s2737_s18, 0  ;;  %p2512_p6 = scmp.lt.s32.totalorder %s2737_s18, 2 }
  0x2b   : > { %s2905_s24 = scalar_select %p26_p2, %s2733_s17, %s28_s28  }
  0x2c   : > { %p37_p8 = por %p36_p4, %p35_p1  ;;  %p3405_p10 = scmp.eq.s32.totalorder %s2839_s19, 1 }
  0x2d   : > { %s173_s5 = sand.u32 1, %s2733_s17   ;;  %s2489_s6 = sshll.u32 %s2737_s18, 8 }
  0x2e   : > { %p2909_p12 = por %p3405_p10, %p35_p1  ;;  %s2475_s7 = sshll.u32 %s173_s5, 4 }
  0x2f   : > { %s2918_s9 = scalar_lea.hbm %s3393_s0, %s2489_s6  ;;  %s177_s25 = scalar_lea.vmem [#allocation2], %s2475_s7 }
  0x30   : > { %s185_s28 = sshll.u32 %s177_s25, 4  ;;  %p2920_p11 = pnand %p2512_p6, %p37_p8  ;;  %s2924_s28 = int_to_ptr.vmem [resolvable:$true] %s185_s28 }
  0x31   : > { %s174_s10 = scalar_lea.sflag [#allocation3], %s173_s5  ;;  %s2637_s11 = scalar_lea.hbm %s2918_s9, 256 }
  0x32   : > { %p2638_p13 = scmp.ne.s32.totalorder %s2918_s9, %s2637_s11  ;;  %p2639_p0 = pneg %p2920_p11 }
  0x33   : > { %s2642_s14 = scalar_lea.hbm %s3393_s0, 512  ;;  %p2643_p7 = scmp.lt.u32.totalorder %s2918_s9, %s3393_s0 }
  0x34   : > { %p2640_p3 = pnand %p2639_p0, %p2638_p13  ;;  %p2644_p9 = scmp.lt.u32.totalorder %s2642_s14, %s2637_s11 }
  0x35   : > { %p2646_p1 = scmp.lt.u32.totalorder %s2637_s11, %s2918_s9 }
  0x36   : > { %p2641_p5 = pneg %p2640_p3  ;;  %p2645_p2 = por %p2644_p9, %p2643_p7 }
  0x38   : > { %p2647_p4 = por %p2646_p1, %p2645_p2 }
  0x3a   : > { %p2648_p6 = pnand %p2647_p4, %p2641_p5 }
  0x3c   : > { %2651 = shalt.err (!%p2648_p6)
}
  0x3d   : > { %s2652_s5 = scalar_lea.vmem %s2924_s28, 256  ;;  %s2742_s7 = smov [#allocation2]  }
  0x3e   : > { %p2653_p8 = scmp.ne.s32.totalorder %s2924_s28, %s2652_s5  ;;  %s2657_s26 = sshll.u32 %s2742_s7, 4  ;;  %s2658_s26 = int_to_ptr.vmem [resolvable:$false] %s2657_s26 }
  0x3f   : > { %s2659_s8 = scalar_lea.vmem %s2658_s26, 512  ;;  %p2660_p3 = scmp.lt.s32.totalorder %s2924_s28, %s2658_s26 }
  0x40   : > { %p2655_p10 = pnand %p2653_p8, %p2639_p0  ;;  %p2661_p7 = scmp.lt.s32.totalorder %s2659_s8, %s2652_s5 }
  0x42   : > { %p2656_p13 = pneg %p2655_p10  ;;  %p2662_p9 = por %p2661_p7, %p2660_p3 }
  0x44   : > { %p2663_p2 = pnand %p2662_p9, %p2656_p13 }
  0x46   : > { %2666 = shalt.err (!%p2663_p2)
}
  0x47   : > { %2506 = dma.hbm_to_vmem [thread:$0]  (!%p2920_p11), %s2918_s9, 256, %s2924_s28, %s174_s10  }
  0x48   : > { %p3408_p5 = scmp.ne.s32.totalorder %s3403_s23, 0 }
  0x49   : > { %s2954_s25 = sand.u32 (!%p3408_p5), 1, %s2729_s16   ;;  %p3409_p0 = scmp.ne.s32.totalorder (!%p3408_p5), %s3401_s21, 0 }
  0x4a   : > { %194 = sbr.rel (%p3408_p5) target bundleno = 579 (0x243), region = 36  ;;  %s2479_s11 = sshll.u32 (!%p3408_p5), %s2954_s25, 4 }
  0x4b   : > { %s197_s12 = scalar_lea.sflag (!%p3408_p5), [#allocation3], %s2954_s25  ;;  %s2960_s13 = scalar_lea.vmem (!%p3408_p5), [#allocation2], %s2479_s11 }
  0x51   : > { %2712 = dma.done.wait (%p3409_p0), %s197_s12, 256  }
  0x52   : > { %2714 = vsyncadd (%p3409_p0), %s197_s12, 4294967040  ;;  %p3410_p11 = scmp.eq.s32.totalorder %s2839_s19, 0 }
  0x54   : > { %2716 = dma.done.wait (%p3410_p11), [#allocation6], 3328   ;;  %p3411_p1 = pmov %p3410_p11 }
  0x55   : > { %v2971_v0 = vld [vmem:[%s2960_s13] sm:$0xff]  ;;  %v2974_v1 = vld [vmem:[%s2960_s13 + $0x8] sm:$0xff]  ;;  %vm298_vm0 = vcmask 1040384   ;;  %s2743_s21 = smov 50   ;;  %s2744_s23 = smov 51   ;;  %v305_v28 = vlaneseq }
  0x56   : > { %2718 = vsyncadd (%p3411_p1), [#allocation6], 4294963968  ;;  %v271_v2 = vrot.slane %v2971_v0, 4  ;;  %v277_v3 = vrot.slane %v2974_v1, 4  ;;  %s2745_s9 = smov 49   ;;  %s2746_s28 = smov 48   ;;  %v233_v39 = vadd.f32 %v2974_v1, %v2971_v0  ;;  %v238_v55 = vmax.f32 %v2971_v0, %v2974_v1 }
  0x57   : > { %s2747_s29 = smov 47   ;;  %s2748_s10 = smov 46   ;;  %v2767_v29 = vmov 1966171168   ;;  %v3034_v31 = vand.u32 127, %v305_v28  ;;  %v3036_v35 = vshrl.u32 %v305_v28, 7 }
  0x58   : > { %v272_v4 = vadd.f32 %v271_v2, %v2971_v0  ;;  %v287_v5 = vmax.f32 %v2971_v0, %v271_v2  ;;  %v278_v6 = vadd.f32 %v277_v3, %v2974_v1  ;;  %v293_v7 = vmax.f32 %v2974_v1, %v277_v3  ;;  %s2749_s14 = smov 45   ;;  %s2750_s20 = smov 35   ;;  %v310_v56 = vld [vmem:[#allocation5] ss:$8 sm:$0x3] }
  0x59   : > { %s2751_s6 = smov 34   ;;  %s2752_s5 = smov 33   ;;  %v317_v30 = vunpack.c.l.s4 %v2767_v29  ;;  %vm348_vm1 = vcmp.lt.s32.totalorder %v3034_v31, 50  ;;  %vm307_vm2 = vcmp.lt.s32.totalorder %v3034_v31, 51  ;;  %vm390_vm3 = vcmp.lt.s32.totalorder %v3034_v31, 49 }
  0x5a   : > { %v273_v8 = vrot.slane %v272_v4, 2  ;;  %v288_v9 = vrot.slane %v287_v5, 2  ;;  %v279_v10 = vrot.slane %v278_v6, 2  ;;  %v294_v11 = vrot.slane %v293_v7, 2  ;;  %s2753_s7 = smov 32   ;;  %s2754_s26 = smov 31  }
  0x5b   : > { %s2755_s8 = smov 30   ;;  %s2756_s12 = smov 29   ;;  %v318_v34 = vunpack.c.0.s8 %v317_v30  ;;  %vm432_vm4 = vcmp.lt.s32.totalorder %v3034_v31, 48  ;;  %v312_v57 = vld [vmem:[#allocation5 + $0x61] ss:$8 sm:$0x3] }
  0x5c   : > { %v274_v12 = vadd.f32 %v273_v8, %v272_v4  ;;  %v289_v13 = vmax.f32 %v287_v5, %v288_v9  ;;  %v280_v14 = vadd.f32 %v279_v10, %v278_v6  ;;  %v295_v15 = vmax.f32 %v293_v7, %v294_v11  ;;  %v352_v63 = vld [vmem:[#allocation5 + $0x1] ss:$8 sm:$0x3]  ;;  %v354_v1 = vld [vmem:[#allocation5 + $0x62] ss:$8 sm:$0x3] }
  0x5d   : > { %v3041_v36 = vsub.s32 %v318_v34, %v3036_v35  ;;  %vm474_vm5 = vcmp.lt.s32.totalorder %v3034_v31, 47  ;;  %vm516_vm6 = vcmp.lt.s32.totalorder %v3034_v31, 46  ;;  %vm558_vm7 = vcmp.lt.s32.totalorder %v3034_v31, 45 }
  0x5e   : > { %v275_v16 = vrot.slane %v274_v12, 1  ;;  %v290_v17 = vrot.slane %v289_v13, 1  ;;  %v281_v18 = vrot.slane %v280_v14, 1  ;;  %v296_v19 = vrot.slane %v295_v15, 1 }
  0x5f   : > { %vm600_vm8 = vcmp.lt.s32.totalorder %v3034_v31, 35  ;;  %vm642_vm9 = vcmp.lt.s32.totalorder %v3034_v31, 34  ;;  %vm684_vm10 = vcmp.lt.s32.totalorder %v3034_v31, 33  ;;  %vm726_vm11 = vcmp.lt.s32.totalorder %v3034_v31, 32 }
  0x60   : > { %v276_v20 = vadd.f32 %v275_v16, %v274_v12  ;;  %v291_v21 = vmax.f32 %v289_v13, %v290_v17  ;;  %v282_v22 = vadd.f32 %v281_v18, %v280_v14  ;;  %v297_v25 = vmax.f32 %v295_v15, %v296_v19  ;;  %v394_v16 = vld [vmem:[#allocation5 + $0x2] ss:$8 sm:$0x3] }
  0x61   : > { %vm768_vm12 = vcmp.lt.s32.totalorder %v3034_v31, 31  ;;  %vm810_vm13 = vcmp.lt.s32.totalorder %v3034_v31, 30  ;;  %vm852_vm14 = vcmp.lt.s32.totalorder %v3034_v31, 29  ;;  %vm894_vm15 = vcmp.lt.s32.totalorder %v3034_v31, 19 }
  0x62   : > { %v284_v23 = vmul.f32 0.125, %v276_v20  ;;  %v285_v24 = vmul.f32 0.125, %v282_v22 }
  0x64   : > { %v2982_v26 = vsel %vm298_vm0, %v284_v23, %v291_v21  ;;  %v2986_v27 = vsel %vm298_vm0, %v285_v24, %v297_v25  ;;  %v396_v23 = vld [vmem:[#allocation5 + $0x63] ss:$8 sm:$0x3]  ;;  %vm936_vm0 = vcmp.lt.s32.totalorder %v3034_v31, 18 }
  0x65   : > { %344 = vrot.lane.b32.xlu1 %v2982_v26, %s2743_s21  ;;  %301 = vrot.lane.b32.xlu0 %v2982_v26, %s2744_s23 }
  0x69   : > { %346 = vrot.lane.b32.xlu1 %v2986_v27, %s2743_s21  ;;  %303 = vrot.lane.b32.xlu0 %v2986_v27, %s2744_s23  ;;  %s2757_s21 = smov 19   ;;  %s2758_s23 = smov 18  }
  0x6d   : > { %388 = vrot.lane.b32.xlu1 %v2986_v27, %s2745_s9  ;;  %386 = vrot.lane.b32.xlu0 %v2982_v26, %s2745_s9  ;;  %s2759_s9 = smov 17  }
  0x71   : > { %430 = vrot.lane.b32.xlu1 %v2986_v27, %s2746_s28  ;;  %428 = vrot.lane.b32.xlu0 %v2982_v26, %s2746_s28  ;;  %s2760_s28 = smov 16  }
  0x75   : > { %472 = vrot.lane.b32.xlu1 %v2986_v27, %s2747_s29  ;;  %470 = vrot.lane.b32.xlu0 %v2982_v26, %s2747_s29  ;;  %s2761_s29 = smov 15  }
  0x79   : > { %514 = vrot.lane.b32.xlu1 %v2986_v27, %s2748_s10  ;;  %512 = vrot.lane.b32.xlu0 %v2982_v26, %s2748_s10  ;;  %s2762_s10 = smov 14  }
  0x7d   : > { %556 = vrot.lane.b32.xlu1 %v2986_v27, %s2749_s14  ;;  %554 = vrot.lane.b32.xlu0 %v2982_v26, %s2749_s14  ;;  %s2763_s14 = smov 13  }
  0x81   : > { %598 = vrot.lane.b32.xlu1 %v2986_v27, %s2750_s20  ;;  %596 = vrot.lane.b32.xlu0 %v2982_v26, %s2750_s20  ;;  %s2764_s20 = smov 3  }
  0x85   : > { %640 = vrot.lane.b32.xlu1 %v2986_v27, %s2751_s6  ;;  %638 = vrot.lane.b32.xlu0 %v2982_v26, %s2751_s6  ;;  %s2765_s6 = smov 2  }
  0x89   : > { %682 = vrot.lane.b32.xlu1 %v2986_v27, %s2752_s5  ;;  %680 = vrot.lane.b32.xlu0 %v2982_v26, %s2752_s5  ;;  %s2766_s5 = smov 1  }
  0x8d   : > { %724 = vrot.lane.b32.xlu1 %v2986_v27, %s2753_s7  ;;  %722 = vrot.lane.b32.xlu0 %v2982_v26, %s2753_s7  ;;  %s2768_s7 = smov 127  }
  0x91   : > { %766 = vrot.lane.b32.xlu1 %v2986_v27, %s2754_s26  ;;  %764 = vrot.lane.b32.xlu0 %v2982_v26, %s2754_s26  ;;  %s2769_s26 = smov 126  }
  0x95   : > { %808 = vrot.lane.b32.xlu1 %v2986_v27, %s2755_s8  ;;  %806 = vrot.lane.b32.xlu0 %v2982_v26, %s2755_s8  ;;  %s2770_s8 = smov 125  }
  0x99   : > { %850 = vrot.lane.b32.xlu1 %v2986_v27, %s2756_s12  ;;  %848 = vrot.lane.b32.xlu0 %v2982_v26, %s2756_s12  ;;  %s2771_s12 = smov 115  }
  0x9d   : > { %892 = vrot.lane.b32.xlu1 %v2986_v27, %s2757_s21  ;;  %890 = vrot.lane.b32.xlu0 %v2982_v26, %s2757_s21  ;;  %s2772_s21 = smov 114  }
  0xa1   : > { %934 = vrot.lane.b32.xlu1 %v2986_v27, %s2758_s23  ;;  %932 = vrot.lane.b32.xlu0 %v2982_v26, %s2758_s23  ;;  %s2773_s23 = smov 113  }
  0xa5   : > { %976 = vrot.lane.b32.xlu1 %v2986_v27, %s2759_s9  ;;  %974 = vrot.lane.b32.xlu0 %v2982_v26, %s2759_s9  ;;  %s2774_s9 = smov 112  }
  0xa9   : > { %1018 = vrot.lane.b32.xlu1 %v2986_v27, %s2760_s28  ;;  %1016 = vrot.lane.b32.xlu0 %v2982_v26, %s2760_s28  ;;  %s2775_s28 = smov 111  }
  0xad   : > { %1060 = vrot.lane.b32.xlu1 %v2986_v27, %s2761_s29  ;;  %1058 = vrot.lane.b32.xlu0 %v2982_v26, %s2761_s29  ;;  %s2776_s29 = smov 110  }
  0xb1   : > { %1102 = vrot.lane.b32.xlu1 %v2986_v27, %s2762_s10  ;;  %1100 = vrot.lane.b32.xlu0 %v2982_v26, %s2762_s10  ;;  %s2777_s10 = smov 109  }
  0xb5   : > { %1144 = vrot.lane.b32.xlu1 %v2986_v27, %s2763_s14  ;;  %1142 = vrot.lane.b32.xlu0 %v2982_v26, %s2763_s14  ;;  %s2778_s14 = smov 99  }
  0xb9   : > { %1186 = vrot.lane.b32.xlu1 %v2986_v27, %s2764_s20  ;;  %1184 = vrot.lane.b32.xlu0 %v2982_v26, %s2764_s20  ;;  %s2779_s20 = smov 98  }
  0xbd   : > { %1228 = vrot.lane.b32.xlu1 %v2986_v27, %s2765_s6  ;;  %1226 = vrot.lane.b32.xlu0 %v2982_v26, %s2765_s6  ;;  %s2780_s6 = smov 97  }
  0xc1   : > { %1270 = vrot.lane.b32.xlu1 %v2986_v27, %s2766_s5  ;;  %1268 = vrot.lane.b32.xlu0 %v2982_v26, %s2766_s5  ;;  %s2781_s5 = smov 96  }
  0xd7   : > { %v345_v32 = vpop.permute.xlu1 %344  ;;  %v302_v33 = vpop.permute.xlu0 %301 }
  0xdb   : > { %v347_v37 = vpop.permute.xlu1 %346  ;;  %v304_v38 = vpop.permute.xlu0 %303 }
  0xdc   : > { %v349_v40 = vsel %vm348_vm1, %v345_v32, %v347_v37  ;;  %v350_v41 = vsel %vm348_vm1, %v347_v37, %v345_v32  ;;  %v308_v42 = vsel %vm307_vm2, %v302_v33, %v304_v38  ;;  %v309_v43 = vsel %vm307_vm2, %v304_v38, %v302_v33  ;;  %v436_v33 = vld [vmem:[#allocation5 + $0x3] ss:$8 sm:$0x3] }
  0xdd   : > { %v357_v44 = vcombine.low %v350_v41, %v349_v40  ;;  %v315_v45 = vcombine.low %v309_v43, %v308_v42  ;;  %v438_v42 = vld [vmem:[#allocation5 + $0x64] ss:$8 sm:$0x3]  ;;  %vm978_vm1 = vcmp.lt.s32.totalorder %v3034_v31, 17  ;;  %vm1020_vm2 = vcmp.lt.s32.totalorder %v3034_v31, 16 }
  0xdf   : > { %v364_v46 = vrot.slane %v357_v44, %v3041_v36  ;;  %v322_v47 = vrot.slane %v315_v45, %v3041_v36  ;;  %v389_v48 = vpop.permute.xlu1 %388  ;;  %v387_v49 = vpop.permute.xlu0 %386 }
  0xe0   : > { %v391_v50 = vsel %vm390_vm3, %v387_v49, %v389_v48  ;;  %v392_v51 = vsel %vm390_vm3, %v389_v48, %v387_v49  ;;  %234 = vadd.xlane.f32.xlu0 %v233_v39  ;;  %v478_v49 = vld [vmem:[#allocation5 + $0x4] ss:$8 sm:$0x3]  ;;  %vm1062_vm3 = vcmp.lt.s32.totalorder %v3034_v31, 15 }
  0xe1   : > { %v375_v52 = vcombine.high %v364_v46, %v364_v46  ;;  %v329_v53 = vrot.slane %v322_v47, %v3041_v36  ;;  %v333_v54 = vcombine.high %v322_v47, %v322_v47  ;;  %v399_v58 = vcombine.low %v392_v51, %v391_v50 }
  0xe2   : > { %v371_v59 = vrot.slane %v364_v46, %v3041_v36 }
  0xe3   : > { %v340_v60 = vrot.slane %v333_v54, %v3041_v36  ;;  %v431_v61 = vpop.permute.xlu1 %430  ;;  %v429_v62 = vpop.permute.xlu0 %428  ;;  %v382_v2 = vrot.slane %v375_v52, %v3041_v36  ;;  %v406_v3 = vrot.slane %v399_v58, %v3041_v36  ;;  %v331_v5 = vmul.f32 %v329_v53, %v310_v56  ;;  %v480_v56 = vld [vmem:[#allocation5 + $0x65] ss:$8 sm:$0x3] }
  0xe4   : > { %v433_v4 = vsel %vm432_vm4, %v429_v62, %v431_v61  ;;  %v434_v0 = vsel %vm432_vm4, %v431_v61, %v429_v62  ;;  %v373_v9 = vmul.f32 %v371_v59, %v352_v63  ;;  %vm1104_vm4 = vcmp.lt.s32.totalorder %v3034_v31, 14 }
  0xe5   : > { %v342_v6 = vmul.f32 %v340_v60, %v312_v57  ;;  %v441_v7 = vcombine.low %v434_v0, %v433_v4  ;;  %239 = vmax.xlane.f32.xlu1 %v238_v55  ;;  %v417_v8 = vcombine.high %v406_v3, %v406_v3  ;;  %v413_v11 = vrot.slane %v406_v3, %v3041_v36  ;;  %v520_v4 = vld [vmem:[#allocation5 + $0x5] ss:$8 sm:$0x3] }
  0xe6   : > { %v384_v15 = vmul.f32 %v382_v2, %v354_v1 }
  0xe7   : > { %v343_v10 = vadd.f32 %v342_v6, %v331_v5  ;;  %v448_v12 = vrot.slane %v441_v7, %v3041_v36  ;;  %v473_v13 = vpop.permute.xlu1 %472  ;;  %v471_v14 = vpop.permute.xlu0 %470  ;;  %v424_v20 = vrot.slane %v417_v8, %v3041_v36  ;;  %v415_v25 = vmul.f32 %v413_v11, %v394_v16  ;;  %v562_v16 = vld [vmem:[#allocation5 + $0x6] ss:$8 sm:$0x3] }
  0xe8   : > { %v475_v17 = vsel %vm474_vm5, %v471_v14, %v473_v13  ;;  %v476_v18 = vsel %vm474_vm5, %v473_v13, %v471_v14  ;;  %vm1146_vm5 = vcmp.lt.s32.totalorder %v3034_v31, 13 }
  0xe9   : > { %v374_v19 = vadd.f32 %v373_v9, %v343_v10  ;;  %v459_v21 = vcombine.high %v448_v12, %v448_v12  ;;  %v483_v22 = vcombine.low %v476_v18, %v475_v17  ;;  %v455_v28 = vrot.slane %v448_v12, %v3041_v36  ;;  %v522_v9 = vld [vmem:[#allocation5 + $0x66] ss:$8 sm:$0x3] }
  0xea   : > { %v426_v39 = vmul.f32 %v424_v20, %v396_v23  ;;  %v564_v23 = vld [vmem:[#allocation5 + $0x67] ss:$8 sm:$0x3] }
  0xeb   : > { %v385_v24 = vadd.f32 %v384_v15, %v374_v19  ;;  %v490_v29 = vrot.slane %v483_v22, %v3041_v36  ;;  %v515_v30 = vpop.permute.xlu1 %514  ;;  %v513_v32 = vpop.permute.xlu0 %512  ;;  %v466_v40 = vrot.slane %v459_v21, %v3041_v36  ;;  %v457_v45 = vmul.f32 %v455_v28, %v436_v33  ;;  %v604_v33 = vld [vmem:[#allocation5 + $0x7] ss:$8 sm:$0x3] }
  0xec   : > { %v517_v34 = vsel %vm516_vm6, %v513_v32, %v515_v30  ;;  %v518_v37 = vsel %vm516_vm6, %v515_v30, %v513_v32  ;;  %vm1188_vm6 = vcmp.lt.s32.totalorder %v3034_v31, 3 }
  0xed   : > { %v416_v38 = vadd.f32 %v415_v25, %v385_v24  ;;  %v501_v41 = vcombine.high %v490_v29, %v490_v29  ;;  %v525_v43 = vcombine.low %v518_v37, %v517_v34  ;;  %v497_v46 = vrot.slane %v490_v29, %v3041_v36 }
  0xee   : > { %v468_v55 = vmul.f32 %v466_v40, %v438_v42  ;;  %v606_v42 = vld [vmem:[#allocation5 + $0x70] ss:$8 sm:$0x3] }
  0xef   : > { %v427_v44 = vadd.f32 %v426_v39, %v416_v38  ;;  %v557_v47 = vpop.permute.xlu1 %556  ;;  %v555_v48 = vpop.permute.xlu0 %554  ;;  %v508_v50 = vrot.slane %v501_v41, %v3041_v36  ;;  %v532_v51 = vrot.slane %v525_v43, %v3041_v36  ;;  %v499_v60 = vmul.f32 %v497_v46, %v478_v49 }
  0xf0   : > { %v559_v52 = vsel %vm558_vm7, %v555_v48, %v557_v47  ;;  %v560_v53 = vsel %vm558_vm7, %v557_v47, %v555_v48  ;;  %vm1230_vm7 = vcmp.lt.s32.totalorder %v3034_v31, 2 }
  0xf1   : > { %v458_v54 = vadd.f32 %v457_v45, %v427_v44  ;;  %v567_v57 = vcombine.low %v560_v53, %v559_v52  ;;  %v543_v58 = vcombine.high %v532_v51, %v532_v51  ;;  %v539_v61 = vrot.slane %v532_v51, %v3041_v36  ;;  %v646_v52 = vld [vmem:[#allocation5 + $0x10] ss:$8 sm:$0x3] }
  0xf2   : > { %v510_v3 = vmul.f32 %v508_v50, %v480_v56 }
  0xf3   : > { %v469_v59 = vadd.f32 %v468_v55, %v458_v54  ;;  %v574_v62 = vrot.slane %v567_v57, %v3041_v36  ;;  %v599_v63 = vpop.permute.xlu1 %598  ;;  %v597_v2 = vpop.permute.xlu0 %596  ;;  %v550_v6 = vrot.slane %v543_v58, %v3041_v36  ;;  %v541_v11 = vmul.f32 %v539_v61, %v520_v4  ;;  %v688_v4 = vld [vmem:[#allocation5 + $0x11] ss:$8 sm:$0x3] }
  0xf4   : > { %v601_v0 = vsel %vm600_vm8, %v597_v2, %v599_v63  ;;  %v602_v1 = vsel %vm600_vm8, %v599_v63, %v597_v2  ;;  %vm1272_vm8 = vcmp.lt.s32.totalorder %v3034_v31, 1 }
  0xf5   : > { %v500_v5 = vadd.f32 %v499_v60, %v469_v59  ;;  %v585_v7 = vcombine.high %v574_v62, %v574_v62  ;;  %v609_v8 = vcombine.low %v602_v1, %v601_v0  ;;  %v581_v12 = vrot.slane %v574_v62, %v3041_v36  ;;  %v648_v59 = vld [vmem:[#allocation5 + $0x71] ss:$8 sm:$0x3] }
  0xf6   : > { %1347 = vrot.lane.b32.xlu1 %v2986_v27, %s2768_s7  ;;  %1345 = vrot.lane.b32.xlu0 %v2982_v26, %s2768_s7  ;;  %v552_v20 = vmul.f32 %v550_v6, %v522_v9  ;;  %v690_v9 = vld [vmem:[#allocation5 + $0x72] ss:$8 sm:$0x3]  ;;  %s2782_s7 = smov 95  }
  0xf7   : > { %v511_v10 = vadd.f32 %v510_v3, %v500_v5  ;;  %v616_v13 = vrot.slane %v609_v8, %v3041_v36  ;;  %v641_v14 = vpop.permute.xlu1 %640  ;;  %v639_v15 = vpop.permute.xlu0 %638  ;;  %v592_v21 = vrot.slane %v585_v7, %v3041_v36  ;;  %v583_v28 = vmul.f32 %v581_v12, %v562_v16 }
  0xf8   : > { %v643_v17 = vsel %vm642_vm9, %v639_v15, %v641_v14  ;;  %v644_v18 = vsel %vm642_vm9, %v641_v14, %v639_v15  ;;  %v730_v14 = vld [vmem:[#allocation5 + $0x12] ss:$8 sm:$0x3]  ;;  %vm242_vm9 = vcmask 15360  }
  0xf9   : > { %v542_v19 = vadd.f32 %v541_v11, %v511_v10  ;;  %v627_v22 = vcombine.high %v616_v13, %v616_v13  ;;  %v651_v24 = vcombine.low %v644_v18, %v643_v17  ;;  %v623_v29 = vrot.slane %v616_v13, %v3041_v36 }
  0xfa   : > { %1389 = vrot.lane.b32.xlu1 %v2986_v27, %s2769_s26  ;;  %1387 = vrot.lane.b32.xlu0 %v2982_v26, %s2769_s26  ;;  %v594_v41 = vmul.f32 %v592_v21, %v564_v23  ;;  %v732_v23 = vld [vmem:[#allocation5 + $0x73] ss:$8 sm:$0x3]  ;;  %s2783_s26 = smov 94  }
  0xfb   : > { %v553_v25 = vadd.f32 %v552_v20, %v542_v19  ;;  %v683_v30 = vpop.permute.xlu1 %682  ;;  %v681_v32 = vpop.permute.xlu0 %680  ;;  %v634_v34 = vrot.slane %v627_v22, %v3041_v36  ;;  %v658_v37 = vrot.slane %v651_v24, %v3041_v36  ;;  %v625_v46 = vmul.f32 %v623_v29, %v604_v33 }
  0xfc   : > { %v685_v38 = vsel %vm684_vm10, %v681_v32, %v683_v30  ;;  %v686_v39 = vsel %vm684_vm10, %v683_v30, %v681_v32  ;;  %v772_v32 = vld [vmem:[#allocation5 + $0x13] ss:$8 sm:$0x3]  ;;  %vm1349_vm10 = vcmp.lt.s32.totalorder %v3034_v31, 127 }
  0xfd   : > { %v584_v40 = vadd.f32 %v583_v28, %v553_v25  ;;  %v693_v43 = vcombine.low %v686_v39, %v685_v38  ;;  %v669_v44 = vcombine.high %v658_v37, %v658_v37  ;;  %v665_v47 = vrot.slane %v658_v37, %v3041_v36 }
  0xfe   : > { %1431 = vrot.lane.b32.xlu1 %v2986_v27, %s2770_s8  ;;  %1429 = vrot.lane.b32.xlu0 %v2982_v26, %s2770_s8  ;;  %v636_v51 = vmul.f32 %v634_v34, %v606_v42  ;;  %s2784_s8 = smov 93  }
  0xff   : > { %v595_v45 = vadd.f32 %v594_v41, %v584_v40  ;;  %v700_v48 = vrot.slane %v693_v43, %v3041_v36  ;;  %v725_v49 = vpop.permute.xlu1 %724  ;;  %v723_v50 = vpop.permute.xlu0 %722  ;;  %v676_v56 = vrot.slane %v669_v44, %v3041_v36  ;;  %v667_v61 = vmul.f32 %v665_v47, %v646_v52  ;;  %v774_v43 = vld [vmem:[#allocation5 + $0x74] ss:$8 sm:$0x3] }
 0x100   : > { %v727_v53 = vsel %vm726_vm11, %v723_v50, %v725_v49  ;;  %v728_v54 = vsel %vm726_vm11, %v725_v49, %v723_v50  ;;  %vm1391_vm11 = vcmp.lt.s32.totalorder %v3034_v31, 126 }
 0x101   : > { %v626_v55 = vadd.f32 %v625_v46, %v595_v45  ;;  %v711_v57 = vcombine.high %v700_v48, %v700_v48  ;;  %v735_v58 = vcombine.low %v728_v54, %v727_v53  ;;  %v707_v62 = vrot.slane %v700_v48, %v3041_v36 }
 0x102   : > { %1473 = vrot.lane.b32.xlu1 %v2986_v27, %s2771_s12  ;;  %1471 = vrot.lane.b32.xlu0 %v2982_v26, %s2771_s12  ;;  %v678_v6 = vmul.f32 %v676_v56, %v648_v59  ;;  %s2785_s12 = smov 83  }
 0x103   : > { %v637_v60 = vadd.f32 %v636_v51, %v626_v55  ;;  %v742_v63 = vrot.slane %v735_v58, %v3041_v36  ;;  %v767_v2 = vpop.permute.xlu1 %766  ;;  %v765_v3 = vpop.permute.xlu0 %764  ;;  %v718_v7 = vrot.slane %v711_v57, %v3041_v36  ;;  %v709_v13 = vmul.f32 %v707_v62, %v688_v4  ;;  %v814_v51 = vld [vmem:[#allocation5 + $0x14] ss:$8 sm:$0x3]  ;;  %v816_v58 = vld [vmem:[#allocation5 + $0x75] ss:$8 sm:$0x3] }
 0x104   : > { %v769_v0 = vsel %vm768_vm12, %v765_v3, %v767_v2  ;;  %v770_v1 = vsel %vm768_vm12, %v767_v2, %v765_v3  ;;  %v856_v4 = vld [vmem:[#allocation5 + $0x15] ss:$8 sm:$0x3]  ;;  %vm1433_vm12 = vcmp.lt.s32.totalorder %v3034_v31, 125 }
 0x105   : > { %v668_v5 = vadd.f32 %v667_v61, %v637_v60  ;;  %v753_v8 = vcombine.high %v742_v63, %v742_v63  ;;  %v749_v10 = vrot.slane %v742_v63, %v3041_v36  ;;  %v777_v11 = vcombine.low %v770_v1, %v769_v0 }
 0x106   : > { %1515 = vrot.lane.b32.xlu1 %v2986_v27, %s2772_s21  ;;  %1513 = vrot.lane.b32.xlu0 %v2982_v26, %s2772_s21  ;;  %v720_v21 = vmul.f32 %v718_v7, %v690_v9  ;;  %v858_v9 = vld [vmem:[#allocation5 + $0x76] ss:$8 sm:$0x3]  ;;  %s2786_s21 = smov 82  }
 0x107   : > { %v679_v12 = vadd.f32 %v678_v6, %v668_v5  ;;  %v809_v15 = vpop.permute.xlu1 %808  ;;  %v807_v16 = vpop.permute.xlu0 %806  ;;  %v784_v17 = vrot.slane %v777_v11, %v3041_v36  ;;  %v760_v22 = vrot.slane %v753_v8, %v3041_v36  ;;  %v751_v24 = vmul.f32 %v749_v10, %v730_v14 }
 0x108   : > { %v811_v18 = vsel %vm810_vm13, %v807_v16, %v809_v15  ;;  %v812_v19 = vsel %vm810_vm13, %v809_v15, %v807_v16  ;;  %vm1475_vm13 = vcmp.lt.s32.totalorder %v3034_v31, 115 }
 0x109   : > { %v710_v20 = vadd.f32 %v709_v13, %v679_v12  ;;  %v791_v28 = vrot.slane %v784_v17, %v3041_v36  ;;  %v795_v29 = vcombine.high %v784_v17, %v784_v17  ;;  %v819_v30 = vcombine.low %v812_v19, %v811_v18  ;;  %v898_v17 = vld [vmem:[#allocation5 + $0x16] ss:$8 sm:$0x3] }
 0x10a   : > { %1557 = vrot.lane.b32.xlu1 %v2986_v27, %s2773_s23  ;;  %1555 = vrot.lane.b32.xlu0 %v2982_v26, %s2773_s23  ;;  %v762_v34 = vmul.f32 %v760_v22, %v732_v23  ;;  %s2787_s23 = smov 81  }
 0x10b   : > { %v721_v25 = vadd.f32 %v720_v21, %v710_v20  ;;  %v851_v37 = vpop.permute.xlu1 %850  ;;  %v849_v38 = vpop.permute.xlu0 %848  ;;  %v793_v40 = vmul.f32 %v791_v28, %v772_v32  ;;  %v802_v41 = vrot.slane %v795_v29, %v3041_v36  ;;  %v826_v42 = vrot.slane %v819_v30, %v3041_v36 }
 0x10c   : > { %v853_v44 = vsel %vm852_vm14, %v849_v38, %v851_v37  ;;  %v854_v45 = vsel %vm852_vm14, %v851_v37, %v849_v38  ;;  %v940_v37 = vld [vmem:[#allocation5 + $0x17] ss:$8 sm:$0x3]  ;;  %vm1517_vm14 = vcmp.lt.s32.totalorder %v3034_v31, 114 }
 0x10d   : > { %v752_v33 = vadd.f32 %v751_v24, %v721_v25  ;;  %v804_v47 = vmul.f32 %v802_v41, %v774_v43  ;;  %v833_v48 = vrot.slane %v826_v42, %v3041_v36  ;;  %v837_v49 = vcombine.high %v826_v42, %v826_v42  ;;  %v900_v24 = vld [vmem:[#allocation5 + $0x77] ss:$8 sm:$0x3] }
 0x10e   : > { %1599 = vrot.lane.b32.xlu1 %v2986_v27, %s2774_s9  ;;  %1597 = vrot.lane.b32.xlu0 %v2982_v26, %s2774_s9  ;;  %v861_v50 = vcombine.low %v854_v45, %v853_v44  ;;  %v942_v44 = vld [vmem:[#allocation5 + $0x80] ss:$8 sm:$0x3]  ;;  %s2788_s9 = smov 80  }
 0x10f   : > { %v763_v39 = vadd.f32 %v762_v34, %v752_v33  ;;  %v893_v53 = vpop.permute.xlu1 %892  ;;  %v891_v54 = vpop.permute.xlu0 %890  ;;  %v835_v55 = vmul.f32 %v833_v48, %v814_v51  ;;  %v844_v56 = vrot.slane %v837_v49, %v3041_v36 }
 0x110   : > { %v868_v57 = vrot.slane %v861_v50, %v3041_v36  ;;  %v895_v59 = vsel %vm894_vm15, %v891_v54, %v893_v53  ;;  %v896_v60 = vsel %vm894_vm15, %v893_v53, %v891_v54  ;;  %vm1559_vm15 = vcmp.lt.s32.totalorder %v3034_v31, 113 }
 0x111   : > { %v794_v46 = vadd.f32 %v793_v40, %v763_v39  ;;  %v846_v62 = vmul.f32 %v844_v56, %v816_v58  ;;  %v903_v3 = vcombine.low %v896_v60, %v895_v59  ;;  %v984_v59 = vld [vmem:[#allocation5 + $0x81] ss:$8 sm:$0x3] }
 0x112   : > { %1641 = vrot.lane.b32.xlu1 %v2986_v27, %s2775_s28  ;;  %1639 = vrot.lane.b32.xlu0 %v2982_v26, %s2775_s28  ;;  %v875_v63 = vrot.slane %v868_v57, %v3041_v36  ;;  %v879_v2 = vcombine.high %v868_v57, %v868_v57  ;;  %s2789_s28 = smov 79  }
 0x113   : > { %v805_v52 = vadd.f32 %v804_v47, %v794_v46  ;;  %v935_v1 = vpop.permute.xlu1 %934  ;;  %v933_v5 = vpop.permute.xlu0 %932  ;;  %v910_v8 = vrot.slane %v903_v3, %v3041_v36 }
 0x114   : > { %v877_v6 = vmul.f32 %v875_v63, %v856_v4  ;;  %v886_v7 = vrot.slane %v879_v2, %v3041_v36  ;;  %v937_v10 = vsel %vm936_vm0, %v933_v5, %v935_v1  ;;  %v938_v11 = vsel %vm936_vm0, %v935_v1, %v933_v5 }
 0x115   : > { %v836_v61 = vadd.f32 %v835_v55, %v805_v52  ;;  %v917_v14 = vrot.slane %v910_v8, %v3041_v36  ;;  %v921_v15 = vcombine.high %v910_v8, %v910_v8  ;;  %v945_v16 = vcombine.low %v938_v11, %v937_v10  ;;  %v982_v52 = vld [vmem:[#allocation5 + $0x20] ss:$8 sm:$0x3]  ;;  %v1026_v10 = vld [vmem:[#allocation5 + $0x82] ss:$8 sm:$0x3] }
 0x116   : > { %1683 = vrot.lane.b32.xlu1 %v2986_v27, %s2776_s29  ;;  %1681 = vrot.lane.b32.xlu0 %v2982_v26, %s2776_s29  ;;  %v888_v13 = vmul.f32 %v886_v7, %v858_v9  ;;  %s2790_s29 = smov 78   ;;  %vm1601_vm0 = vcmp.lt.s32.totalorder %v3034_v31, 112 }
 0x117   : > { %v847_v0 = vadd.f32 %v846_v62, %v836_v61  ;;  %v977_v19 = vpop.permute.xlu1 %976  ;;  %v975_v20 = vpop.permute.xlu0 %974  ;;  %v919_v21 = vmul.f32 %v917_v14, %v898_v17  ;;  %v928_v22 = vrot.slane %v921_v15, %v3041_v36  ;;  %v952_v23 = vrot.slane %v945_v16, %v3041_v36 }
 0x118   : > { %v979_v25 = vsel %vm978_vm1, %v975_v20, %v977_v19  ;;  %v980_v28 = vsel %vm978_vm1, %v977_v19, %v975_v20  ;;  %vm1643_vm1 = vcmp.lt.s32.totalorder %v3034_v31, 111 }
 0x119   : > { %v878_v12 = vadd.f32 %v877_v6, %v847_v0  ;;  %v930_v30 = vmul.f32 %v928_v22, %v900_v24  ;;  %v959_v32 = vrot.slane %v952_v23, %v3041_v36  ;;  %v963_v33 = vcombine.high %v952_v23, %v952_v23  ;;  %v1024_v0 = vld [vmem:[#allocation5 + $0x21] ss:$8 sm:$0x3] }
 0x11a   : > { %1725 = vrot.lane.b32.xlu1 %v2986_v27, %s2777_s10  ;;  %1723 = vrot.lane.b32.xlu0 %v2982_v26, %s2777_s10  ;;  %v987_v34 = vcombine.low %v980_v28, %v979_v25  ;;  %v1068_v25 = vld [vmem:[#allocation5 + $0x83] ss:$8 sm:$0x3]  ;;  %s2791_s10 = smov 77  }
 0x11b   : > { %v889_v18 = vadd.f32 %v888_v13, %v878_v12  ;;  %v1019_v39 = vpop.permute.xlu1 %1018  ;;  %v1017_v40 = vpop.permute.xlu0 %1016  ;;  %v961_v41 = vmul.f32 %v959_v32, %v940_v37  ;;  %v970_v42 = vrot.slane %v963_v33, %v3041_v36 }
 0x11c   : > { %v994_v43 = vrot.slane %v987_v34, %v3041_v36  ;;  %v1021_v45 = vsel %vm1020_vm2, %v1017_v40, %v1019_v39  ;;  %v1022_v46 = vsel %vm1020_vm2, %v1019_v39, %v1017_v40  ;;  %vm1685_vm2 = vcmp.lt.s32.totalorder %v3034_v31, 110 }
 0x11d   : > { %v920_v29 = vadd.f32 %v919_v21, %v889_v18  ;;  %v972_v48 = vmul.f32 %v970_v42, %v942_v44  ;;  %v1029_v51 = vcombine.low %v1022_v46, %v1021_v45  ;;  %v1066_v18 = vld [vmem:[#allocation5 + $0x22] ss:$8 sm:$0x3]  ;;  %v1110_v45 = vld [vmem:[#allocation5 + $0x84] ss:$8 sm:$0x3] }
 0x11e   : > { %1767 = vrot.lane.b32.xlu1 %v2986_v27, %s2778_s14  ;;  %1765 = vrot.lane.b32.xlu0 %v2982_v26, %s2778_s14  ;;  %v1001_v49 = vrot.slane %v994_v43, %v3041_v36  ;;  %v1005_v50 = vcombine.high %v994_v43, %v994_v43 }
 0x11f   : > { %v931_v38 = vadd.f32 %v930_v30, %v920_v29  ;;  %v1061_v54 = vpop.permute.xlu1 %1060  ;;  %v1059_v55 = vpop.permute.xlu0 %1058  ;;  %v1036_v58 = vrot.slane %v1029_v51, %v3041_v36 }
 0x120   : > { %v1003_v56 = vmul.f32 %v1001_v49, %v982_v52  ;;  %v1012_v57 = vrot.slane %v1005_v50, %v3041_v36  ;;  %v1063_v60 = vsel %vm1062_vm3, %v1059_v55, %v1061_v54  ;;  %v1064_v61 = vsel %vm1062_vm3, %v1061_v54, %v1059_v55 }
 0x121   : > { %v962_v47 = vadd.f32 %v961_v41, %v931_v38  ;;  %v1043_v2 = vrot.slane %v1036_v58, %v3041_v36  ;;  %v1047_v3 = vcombine.high %v1036_v58, %v1036_v58  ;;  %v1071_v4 = vcombine.low %v1064_v61, %v1063_v60  ;;  %v1108_v38 = vld [vmem:[#allocation5 + $0x23] ss:$8 sm:$0x3]  ;;  %v1152_v60 = vld [vmem:[#allocation5 + $0x85] ss:$8 sm:$0x3] }
 0x122   : > { %1809 = vrot.lane.b32.xlu1 %v2986_v27, %s2779_s20  ;;  %1807 = vrot.lane.b32.xlu0 %v2982_v26, %s2779_s20  ;;  %v1014_v63 = vmul.f32 %v1012_v57, %v984_v59  ;;  %vm1727_vm3 = vcmp.lt.s32.totalorder %v3034_v31, 109 }
 0x123   : > { %v973_v53 = vadd.f32 %v972_v48, %v962_v47  ;;  %v1103_v5 = vpop.permute.xlu1 %1102  ;;  %v1101_v6 = vpop.permute.xlu0 %1100  ;;  %v1045_v7 = vmul.f32 %v1043_v2, %v1024_v0  ;;  %v1054_v8 = vrot.slane %v1047_v3, %v3041_v36  ;;  %v1078_v9 = vrot.slane %v1071_v4, %v3041_v36 }
 0x124   : > { %v1105_v11 = vsel %vm1104_vm4, %v1101_v6, %v1103_v5  ;;  %v1106_v12 = vsel %vm1104_vm4, %v1103_v5, %v1101_v6  ;;  %vm1769_vm4 = vcmp.lt.s32.totalorder %v3034_v31, 99 }
 0x125   : > { %v1004_v62 = vadd.f32 %v1003_v56, %v973_v53  ;;  %v1056_v14 = vmul.f32 %v1054_v8, %v1026_v10  ;;  %v1085_v15 = vrot.slane %v1078_v9, %v3041_v36  ;;  %v1089_v16 = vcombine.high %v1078_v9, %v1078_v9  ;;  %v1150_v53 = vld [vmem:[#allocation5 + $0x24] ss:$8 sm:$0x3] }
 0x126   : > { %1851 = vrot.lane.b32.xlu1 %v2986_v27, %s2780_s6  ;;  %1849 = vrot.lane.b32.xlu0 %v2982_v26, %s2780_s6  ;;  %v1113_v17 = vcombine.low %v1106_v12, %v1105_v11  ;;  %v1194_v11 = vld [vmem:[#allocation5 + $0x86] ss:$8 sm:$0x3] }
 0x127   : > { %v1015_v1 = vadd.f32 %v1014_v63, %v1004_v62  ;;  %v1145_v20 = vpop.permute.xlu1 %1144  ;;  %v1143_v21 = vpop.permute.xlu0 %1142  ;;  %v1087_v22 = vmul.f32 %v1085_v15, %v1066_v18  ;;  %v1096_v23 = vrot.slane %v1089_v16, %v3041_v36 }
 0x128   : > { %v1120_v24 = vrot.slane %v1113_v17, %v3041_v36  ;;  %v1147_v28 = vsel %vm1146_vm5, %v1143_v21, %v1145_v20  ;;  %v1148_v29 = vsel %vm1146_vm5, %v1145_v20, %v1143_v21  ;;  %vm1811_vm5 = vcmp.lt.s32.totalorder %v3034_v31, 98 }
 0x129   : > { %v1046_v13 = vadd.f32 %v1045_v7, %v1015_v1  ;;  %v1098_v32 = vmul.f32 %v1096_v23, %v1068_v25  ;;  %v1155_v37 = vcombine.low %v1148_v29, %v1147_v28  ;;  %v1192_v1 = vld [vmem:[#allocation5 + $0x25] ss:$8 sm:$0x3]  ;;  %v1316_v25 = vcombine.low %v2982_v26, %v2986_v27 }
 0x12a   : > { %1893 = vrot.lane.b32.xlu1 %v2986_v27, %s2781_s5  ;;  %1891 = vrot.lane.b32.xlu0 %v2982_v26, %s2781_s5  ;;  %v1127_v33 = vrot.slane %v1120_v24, %v3041_v36  ;;  %v1131_v34 = vcombine.high %v1120_v24, %v1120_v24  ;;  %v1236_v24 = vld [vmem:[#allocation5 + $0x87] ss:$8 sm:$0x3] }
 0x12b   : > { %v1057_v19 = vadd.f32 %v1056_v14, %v1046_v13  ;;  %v1187_v40 = vpop.permute.xlu1 %1186  ;;  %v1185_v41 = vpop.permute.xlu0 %1184  ;;  %v1162_v44 = vrot.slane %v1155_v37, %v3041_v36 }
 0x12c   : > { %v1129_v42 = vmul.f32 %v1127_v33, %v1108_v38  ;;  %v1138_v43 = vrot.slane %v1131_v34, %v3041_v36  ;;  %v1189_v46 = vsel %vm1188_vm6, %v1185_v41, %v1187_v40  ;;  %v1190_v47 = vsel %vm1188_vm6, %v1187_v40, %v1185_v41  ;;  %v1276_v33 = vld [vmem:[#allocation5 + $0x27] ss:$8 sm:$0x3] }
 0x12d   : > { %v1088_v30 = vadd.f32 %v1087_v22, %v1057_v19  ;;  %v1169_v50 = vrot.slane %v1162_v44, %v3041_v36  ;;  %v1173_v51 = vcombine.high %v1162_v44, %v1162_v44  ;;  %v1197_v52 = vcombine.low %v1190_v47, %v1189_v46  ;;  %v1234_v19 = vld [vmem:[#allocation5 + $0x26] ss:$8 sm:$0x3] }
 0x12e   : > { %1935 = vrot.lane.b32.xlu1 %v2986_v27, %s2782_s7  ;;  %1933 = vrot.lane.b32.xlu0 %v2982_v26, %s2782_s7  ;;  %v1140_v49 = vmul.f32 %v1138_v43, %v1110_v45  ;;  %v1323_v34 = vrot.slane %v1316_v25, %v3041_v36  ;;  %v1311_v45 = vld [vmem:[#allocation5 + $0x30] ss:$8 sm:$0x3]  ;;  %vm1853_vm6 = vcmp.lt.s32.totalorder %v3034_v31, 97  ;;  %s2490_s7 = sshll.u32 %s2839_s19, 8  ;;  %s2377_s19 = scalar_lea.sflag [#allocation4], %s2954_s25 }
 0x12f   : > { %v1099_v39 = vadd.f32 %v1098_v32, %v1088_v30  ;;  %v1229_v55 = vpop.permute.xlu1 %1228  ;;  %v1227_v56 = vpop.permute.xlu0 %1226  ;;  %v1171_v57 = vmul.f32 %v1169_v50, %v1150_v53  ;;  %v1180_v58 = vrot.slane %v1173_v51, %v3041_v36  ;;  %v1204_v59 = vrot.slane %v1197_v52, %v3041_v36 }
 0x130   : > { %v1231_v61 = vsel %vm1230_vm7, %v1227_v56, %v1229_v55  ;;  %v1232_v62 = vsel %vm1230_vm7, %v1229_v55, %v1227_v56  ;;  %v1330_v43 = vrot.slane %v1323_v34, %v3041_v36  ;;  %v1334_v46 = vcombine.high %v1323_v34, %v1323_v34 }
 0x131   : > { %v1130_v48 = vadd.f32 %v1129_v42, %v1099_v39  ;;  %v1182_v2 = vmul.f32 %v1180_v58, %v1152_v60  ;;  %v1211_v3 = vrot.slane %v1204_v59, %v3041_v36  ;;  %v1215_v4 = vcombine.high %v1204_v59, %v1204_v59  ;;  %v231_v39 = vld [vmem:[%s3394_s1] sm:$0xff] }
 0x132   : > { %1977 = vrot.lane.b32.xlu1 %v2986_v27, %s2783_s26  ;;  %1975 = vrot.lane.b32.xlu0 %v2982_v26, %s2783_s26  ;;  %v1239_v0 = vcombine.low %v1232_v62, %v1231_v61  ;;  %v1332_v53 = vmul.f32 %v1330_v43, %v1311_v45  ;;  %v1313_v61 = vld [vmem:[#allocation5 + $0x91] ss:$8 sm:$0x3]  ;;  %vm1895_vm7 = vcmp.lt.s32.totalorder %v3034_v31, 96  ;;  %s228_s26 = scalar_lea.vmem [#allocation7], %s2479_s11 }
 0x133   : > { %v1141_v54 = vadd.f32 %v1140_v49, %v1130_v48  ;;  %v1271_v6 = vpop.permute.xlu1 %1270  ;;  %v1269_v7 = vpop.permute.xlu0 %1268  ;;  %v1213_v8 = vmul.f32 %v1211_v3, %v1192_v1  ;;  %v1222_v9 = vrot.slane %v1215_v4, %v3041_v36 }
 0x134   : > { %v1246_v10 = vrot.slane %v1239_v0, %v3041_v36  ;;  %v1273_v12 = vsel %vm1272_vm8, %v1269_v7, %v1271_v6  ;;  %v1274_v13 = vsel %vm1272_vm8, %v1271_v6, %v1269_v7  ;;  %vm1937_vm8 = vcmp.lt.s32.totalorder %v3034_v31, 95 }
 0x135   : > { %v1172_v63 = vadd.f32 %v1171_v57, %v1141_v54  ;;  %v1224_v15 = vmul.f32 %v1222_v9, %v1194_v11  ;;  %v1281_v18 = vcombine.low %v1274_v13, %v1273_v12  ;;  %v1341_v57 = vrot.slane %v1334_v46, %v3041_v36  ;;  %v1353_v11 = vld [vmem:[#allocation5 + $0x31] ss:$8 sm:$0x3] }
 0x136   : > { %2019 = vrot.lane.b32.xlu1 %v2986_v27, %s2784_s8  ;;  %2017 = vrot.lane.b32.xlu0 %v2982_v26, %s2784_s8  ;;  %v1253_v16 = vrot.slane %v1246_v10, %v3041_v36  ;;  %v1257_v17 = vcombine.high %v1246_v10, %v1246_v10  ;;  %s2391_s8 = sshll.u32 %s228_s26, 4  ;;  %s3351_s8 = int_to_ptr.vmem [resolvable:$true] %s2391_s8 }
 0x137   : > { %v1183_v5 = vadd.f32 %v1182_v2, %v1172_v63  ;;  %v1288_v23 = vrot.slane %v1281_v18, %v3041_v36  ;;  %s2667_s11 = scalar_lea.vmem %s3351_s8, 256 }
 0x138   : > { %v1255_v21 = vmul.f32 %v1253_v16, %v1234_v19  ;;  %v1264_v22 = vrot.slane %v1257_v17, %v3041_v36  ;;  %v1355_v19 = vld [vmem:[#allocation5 + $0x92] ss:$8 sm:$0x3]  ;;  %p2668_p4 = scmp.ne.s32.totalorder %s3351_s8, %s2667_s11 }
 0x139   : > { %v1214_v14 = vadd.f32 %v1213_v8, %v1183_v5  ;;  %v1295_v30 = vrot.slane %v1288_v23, %v3041_v36  ;;  %v1299_v32 = vcombine.high %v1288_v23, %v1288_v23  ;;  %v1343_v5 = vmul.f32 %v1341_v57, %v1313_v61 }
 0x13a   : > { %2061 = vrot.lane.b32.xlu1 %v2986_v27, %s2785_s12  ;;  %2059 = vrot.lane.b32.xlu0 %v2982_v26, %s2785_s12  ;;  %v1266_v29 = vmul.f32 %v1264_v22, %v1236_v24  ;;  %p2669_p6 = pnand %p2668_p4, %p2909_p12 }
 0x13b   : > { %v1225_v20 = vadd.f32 %v1224_v15, %v1214_v14  ;;  %v1297_v41 = vmul.f32 %v1295_v30, %v1276_v33  ;;  %v1306_v42 = vrot.slane %v1299_v32, %v3041_v36 }
 0x13c   : > { %p2670_p8 = pneg %p2669_p6 }
 0x13d   : > { %v1256_v28 = vadd.f32 %v1255_v21, %v1225_v20 }
 0x13e   : > { %2103 = vrot.lane.b32.xlu1 %v2986_v27, %s2786_s21  ;;  %2101 = vrot.lane.b32.xlu0 %v2982_v26, %s2786_s21 }
 0x13f   : > { %v1267_v37 = vadd.f32 %v1266_v29, %v1256_v28  ;;  %v1395_v29 = vld [vmem:[#allocation5 + $0x32] ss:$8 sm:$0x3] }
 0x141   : > { %v1298_v44 = vadd.f32 %v1297_v41, %v1267_v37 }
 0x142   : > { %2145 = vrot.lane.b32.xlu1 %v2986_v27, %s2787_s23  ;;  %2143 = vrot.lane.b32.xlu0 %v2982_v26, %s2787_s23  ;;  %s3349_s23 = scalar_lea.hbm %s3397_s4, %s2490_s7 }
 0x146   : > { %2187 = vrot.lane.b32.xlu1 %v2986_v27, %s2788_s9  ;;  %2185 = vrot.lane.b32.xlu0 %v2982_v26, %s2788_s9 }
 0x14a   : > { %2229 = vrot.lane.b32.xlu1 %v2986_v27, %s2789_s28  ;;  %2227 = vrot.lane.b32.xlu0 %v2982_v26, %s2789_s28 }
 0x14e   : > { %2271 = vrot.lane.b32.xlu1 %v2986_v27, %s2790_s29  ;;  %2269 = vrot.lane.b32.xlu0 %v2982_v26, %s2790_s29 }
 0x152   : > { %2313 = vrot.lane.b32.xlu1 %v2986_v27, %s2791_s10  ;;  %2311 = vrot.lane.b32.xlu0 %v2982_v26, %s2791_s10  ;;  %v1278_v26 = vld [vmem:[#allocation5 + $0x90] ss:$8 sm:$0x3] }
 0x153   : > { %v1308_v50 = vmul.f32 %v1306_v42, %v1278_v26  ;;  %v1397_v26 = vld [vmem:[#allocation5 + $0x93] ss:$8 sm:$0x3] }
 0x155   : > { %v1309_v54 = vadd.f32 %v1308_v50, %v1298_v44  ;;  %v232_v50 = vld [vmem:[%s3395_s2] sm:$0xff] }
 0x157   : > { %v1333_v1 = vadd.f32 %v1332_v53, %v1309_v54 }
 0x159   : > { %v1344_v18 = vadd.f32 %v1343_v5, %v1333_v1 }
 0x16d   : > { %v235_v38 = vpop.xlane.xlu0 %234 }
 0x16e   : > { %v237_v40 = vmul.f32 0.00390625, %v235_v38 }
 0x170   : > { %v241_v27 = vmul.f32 %v237_v40, %v231_v39 }
 0x171   : > { %v1346_v47 = vpop.permute.xlu0 %1345 }
 0x172   : > { %v240_v48 = vpop.xlane.xlu1 %239  ;;  %v243_v49 = vsel %vm242_vm9, %v241_v27, 0.0 }
 0x173   : > { %v244_v51 = vrot.slane %v243_v49, 4  ;;  %v250_v52 = vmul.f32 %v240_v48, %v231_v39 }
 0x175   : > { %v245_v55 = vadd.f32 %v244_v51, %v243_v49  ;;  %v251_v56 = vsel %vm242_vm9, %v250_v52, 0.0  ;;  %v1388_v58 = vpop.permute.xlu0 %1387  ;;  %v1437_v52 = vld [vmem:[#allocation5 + $0x33] ss:$8 sm:$0x3] }
 0x176   : > { %v252_v59 = vrot.slane %v251_v56, 4  ;;  %v1348_v60 = vpop.permute.xlu1 %1347 }
 0x177   : > { %v246_v62 = vrot.slane %v245_v55, 2  ;;  %v1350_v63 = vsel %vm1349_vm10, %v1346_v47, %v1348_v60  ;;  %v1351_v2 = vsel %vm1349_vm10, %v1348_v60, %v1346_v47  ;;  %vm2021_vm10 = vcmp.lt.s32.totalorder %v3034_v31, 93 }
 0x178   : > { %v253_v3 = vadd.f32 %v252_v59, %v251_v56  ;;  %v1358_v4 = vcombine.low %v1350_v63, %v1351_v2  ;;  %v1439_v59 = vld [vmem:[#allocation5 + $0x94] ss:$8 sm:$0x3] }
 0x179   : > { %v247_v0 = vadd.f32 %v246_v62, %v245_v55  ;;  %v1430_v6 = vpop.permute.xlu0 %1429 }
 0x17a   : > { %v254_v7 = vrot.slane %v253_v3, 2  ;;  %v1365_v8 = vrot.slane %v1358_v4, %v3041_v36  ;;  %v1390_v9 = vpop.permute.xlu1 %1389  ;;  %v1479_v4 = vld [vmem:[#allocation5 + $0x34] ss:$8 sm:$0x3] }
 0x17b   : > { %v248_v10 = vrot.slane %v247_v0, 1  ;;  %v1392_v12 = vsel %vm1391_vm11, %v1388_v58, %v1390_v9  ;;  %v1393_v13 = vsel %vm1391_vm11, %v1390_v9, %v1388_v58  ;;  %vm2063_vm11 = vcmp.lt.s32.totalorder %v3034_v31, 83 }
 0x17c   : > { %v255_v14 = vadd.f32 %v254_v7, %v253_v3  ;;  %v1372_v15 = vrot.slane %v1365_v8, %v3041_v36  ;;  %v1376_v16 = vcombine.high %v1365_v8, %v1365_v8  ;;  %v1400_v17 = vcombine.low %v1392_v12, %v1393_v13 }
 0x17d   : > { %v1472_v20 = vpop.permute.xlu0 %1471  ;;  %v249_v21 = vadd.f32 %v248_v10, %v247_v0  ;;  %v1481_v10 = vld [vmem:[#allocation5 + $0x95] ss:$8 sm:$0x3] }
 0x17e   : > { %v256_v22 = vrot.slane %v255_v14, 1  ;;  %v1374_v23 = vmul.f32 %v1372_v15, %v1353_v11  ;;  %v1383_v24 = vrot.slane %v1376_v16, %v3041_v36  ;;  %v1407_v25 = vrot.slane %v1400_v17, %v3041_v36  ;;  %v1432_v28 = vpop.permute.xlu1 %1431 }
 0x17f   : > { %v1434_v30 = vsel %vm1433_vm12, %v1430_v6, %v1432_v28  ;;  %v1435_v32 = vsel %vm1433_vm12, %v1432_v28, %v1430_v6  ;;  %v258_v44 = vmax.f32 %v249_v21, 0.0  ;;  %v1521_v21 = vld [vmem:[#allocation5 + $0x35] ss:$8 sm:$0x3]  ;;  %vm2105_vm12 = vcmp.lt.s32.totalorder %v3034_v31, 82 }
 0x180   : > { %v257_v33 = vadd.f32 %v256_v22, %v255_v14  ;;  %v1375_v34 = vadd.f32 %v1374_v23, %v1344_v18  ;;  %v1385_v37 = vmul.f32 %v1383_v24, %v1355_v19  ;;  %v1414_v38 = vrot.slane %v1407_v25, %v3041_v36 }
 0x181   : > { %v1418_v39 = vcombine.high %v1407_v25, %v1407_v25  ;;  %v1442_v40 = vcombine.low %v1434_v30, %v1435_v32  ;;  %v1514_v41 = vpop.permute.xlu0 %1513 }
 0x182   : > { %v1386_v42 = vadd.f32 %v1385_v37, %v1375_v34  ;;  %v1416_v27 = vmul.f32 %v1414_v38, %v1395_v29  ;;  %v1474_v43 = vpop.permute.xlu1 %1473  ;;  %v259_v45 = vmax.f32 %v257_v33, 0.0  ;;  %v1523_v29 = vld [vmem:[#allocation5 + $0x96] ss:$8 sm:$0x3] }
 0x183   : > { %v1425_v46 = vrot.slane %v1418_v39, %v3041_v36  ;;  %v1449_v47 = vrot.slane %v1442_v40, %v3041_v36  ;;  %v1476_v48 = vsel %vm1475_vm13, %v1472_v20, %v1474_v43  ;;  %v1477_v49 = vsel %vm1475_vm13, %v1474_v43, %v1472_v20  ;;  %v1563_v38 = vld [vmem:[#allocation5 + $0x36] ss:$8 sm:$0x3]  ;;  %v1565_v43 = vld [vmem:[#allocation5 + $0x97] ss:$8 sm:$0x3] }
 0x184   : > { %v1417_v51 = vadd.f32 %v1416_v27, %v1386_v42  ;;  %v1484_v53 = vcombine.low %v1476_v48, %v1477_v49  ;;  %v260_v54 = vadd.f32 %v259_v45, %v258_v44  ;;  %vm2147_vm13 = vcmp.lt.s32.totalorder %v3034_v31, 81 }
 0x185   : > { %v1427_v55 = vmul.f32 %v1425_v46, %v1397_v26  ;;  %v1456_v56 = vrot.slane %v1449_v47, %v3041_v36  ;;  %v1460_v57 = vcombine.high %v1449_v47, %v1449_v47  ;;  %v1556_v58 = vpop.permute.xlu0 %1555 }
 0x186   : > { %v1491_v60 = vrot.slane %v1484_v53, %v3041_v36  ;;  %v1516_v61 = vpop.permute.xlu1 %1515  ;;  %v261_v62 = vmul.f32 %v260_v54, %v232_v50  ;;  %v1605_v54 = vld [vmem:[#allocation5 + $0x37] ss:$8 sm:$0x3] }
 0x187   : > { %v1428_v63 = vadd.f32 %v1427_v55, %v1417_v51  ;;  %v1458_v2 = vmul.f32 %v1456_v56, %v1437_v52  ;;  %v1467_v3 = vrot.slane %v1460_v57, %v3041_v36  ;;  %v1518_v0 = vsel %vm1517_vm14, %v1514_v41, %v1516_v61 }
 0x188   : > { %v1498_v1 = vrot.slane %v1491_v60, %v3041_v36  ;;  %v1502_v5 = vcombine.high %v1491_v60, %v1491_v60  ;;  %v1519_v6 = vsel %vm1517_vm14, %v1516_v61, %v1514_v41  ;;  %v262_v7 = vsel %vm242_vm9, %v261_v62, 0.0  ;;  %v1607_v60 = vld [vmem:[#allocation5 + $0xa0] ss:$8 sm:$0x3] }
 0x189   : > { %v1459_v8 = vadd.f32 %v1458_v2, %v1428_v63  ;;  %v1469_v9 = vmul.f32 %v1467_v3, %v1439_v59  ;;  %v1526_v11 = vcombine.low %v1518_v0, %v1519_v6  ;;  %263 = vadd.xlane.f32.xlu0 %v262_v7  ;;  %v1598_v12 = vpop.permute.xlu0 %1597  ;;  %vm1979_vm9 = vcmp.lt.s32.totalorder %v3034_v31, 94 }
 0x18a   : > { %v1500_v13 = vmul.f32 %v1498_v1, %v1479_v4  ;;  %v1509_v14 = vrot.slane %v1502_v5, %v3041_v36  ;;  %v1558_v15 = vpop.permute.xlu1 %1557  ;;  %v1647_v4 = vld [vmem:[#allocation5 + $0x40] ss:$8 sm:$0x3]  ;;  %vm2189_vm14 = vcmp.lt.s32.totalorder %v3034_v31, 80 }
 0x18b   : > { %v1470_v16 = vadd.f32 %v1469_v9, %v1459_v8  ;;  %v1533_v17 = vrot.slane %v1526_v11, %v3041_v36  ;;  %v1560_v18 = vsel %vm1559_vm15, %v1556_v58, %v1558_v15  ;;  %v1561_v19 = vsel %vm1559_vm15, %v1558_v15, %v1556_v58  ;;  %v1649_v9 = vld [vmem:[#allocation5 + $0xa1] ss:$8 sm:$0x3] }
 0x18c   : > { %v1511_v20 = vmul.f32 %v1509_v14, %v1481_v10  ;;  %v1568_v22 = vcombine.low %v1560_v18, %v1561_v19  ;;  %vm2231_vm15 = vcmp.lt.s32.totalorder %v3034_v31, 79 }
 0x18d   : > { %v1501_v23 = vadd.f32 %v1500_v13, %v1470_v16  ;;  %v1540_v24 = vrot.slane %v1533_v17, %v3041_v36  ;;  %v1544_v25 = vcombine.high %v1533_v17, %v1533_v17  ;;  %v1640_v28 = vpop.permute.xlu0 %1639 }
 0x18e   : > { %v1575_v30 = vrot.slane %v1568_v22, %v3041_v36  ;;  %v1600_v32 = vpop.permute.xlu1 %1599 }
 0x18f   : > { %v1512_v33 = vadd.f32 %v1511_v20, %v1501_v23  ;;  %v1542_v34 = vmul.f32 %v1540_v24, %v1521_v21  ;;  %v1551_v37 = vrot.slane %v1544_v25, %v3041_v36  ;;  %v1602_v39 = vsel %vm1601_vm0, %v1598_v12, %v1600_v32  ;;  %v1689_v20 = vld [vmem:[#allocation5 + $0x41] ss:$8 sm:$0x3] }
 0x190   : > { %v1582_v40 = vrot.slane %v1575_v30, %v3041_v36  ;;  %v1586_v41 = vcombine.high %v1575_v30, %v1575_v30  ;;  %v1603_v42 = vsel %vm1601_vm0, %v1600_v32, %v1598_v12  ;;  %vm2273_vm0 = vcmp.lt.s32.totalorder %v3034_v31, 78 }
 0x191   : > { %v1543_v26 = vadd.f32 %v1542_v34, %v1512_v33  ;;  %v1553_v27 = vmul.f32 %v1551_v37, %v1523_v29  ;;  %v1610_v44 = vcombine.low %v1602_v39, %v1603_v42  ;;  %v1682_v45 = vpop.permute.xlu0 %1681  ;;  %v1731_v37 = vld [vmem:[#allocation5 + $0x42] ss:$8 sm:$0x3] }
 0x192   : > { %v1584_v46 = vmul.f32 %v1582_v40, %v1563_v38  ;;  %v1593_v47 = vrot.slane %v1586_v41, %v3041_v36  ;;  %v1642_v48 = vpop.permute.xlu1 %1641 }
 0x193   : > { %v1554_v49 = vadd.f32 %v1553_v27, %v1543_v26  ;;  %v1617_v50 = vrot.slane %v1610_v44, %v3041_v36  ;;  %v1644_v51 = vsel %vm1643_vm1, %v1640_v28, %v1642_v48  ;;  %v1645_v52 = vsel %vm1643_vm1, %v1642_v48, %v1640_v28  ;;  %v1691_v28 = vld [vmem:[#allocation5 + $0xa2] ss:$8 sm:$0x3]  ;;  %v1733_v27 = vld [vmem:[#allocation5 + $0xa3] ss:$8 sm:$0x3] }
 0x194   : > { %v1595_v53 = vmul.f32 %v1593_v47, %v1565_v43  ;;  %v1652_v55 = vcombine.low %v1644_v51, %v1645_v52  ;;  %vm2315_vm1 = vcmp.lt.s32.totalorder %v3034_v31, 77 }
 0x195   : > { %v1585_v56 = vadd.f32 %v1584_v46, %v1554_v49  ;;  %v1624_v57 = vrot.slane %v1617_v50, %v3041_v36  ;;  %v1628_v58 = vcombine.high %v1617_v50, %v1617_v50  ;;  %v1724_v59 = vpop.permute.xlu0 %1723 }
 0x196   : > { %v1659_v61 = vrot.slane %v1652_v55, %v3041_v36  ;;  %v1684_v62 = vpop.permute.xlu1 %1683 }
 0x197   : > { %v1596_v63 = vadd.f32 %v1595_v53, %v1585_v56  ;;  %v1626_v2 = vmul.f32 %v1624_v57, %v1605_v54  ;;  %v1635_v3 = vrot.slane %v1628_v58, %v3041_v36  ;;  %v1686_v0 = vsel %vm1685_vm2, %v1682_v45, %v1684_v62  ;;  %v1773_v53 = vld [vmem:[#allocation5 + $0x43] ss:$8 sm:$0x3] }
 0x198   : > { %v1666_v1 = vrot.slane %v1659_v61, %v3041_v36  ;;  %v1670_v5 = vcombine.high %v1659_v61, %v1659_v61  ;;  %v1687_v6 = vsel %vm1685_vm2, %v1684_v62, %v1682_v45 }
 0x199   : > { %v1627_v7 = vadd.f32 %v1626_v2, %v1596_v63  ;;  %v1637_v8 = vmul.f32 %v1635_v3, %v1607_v60  ;;  %v1694_v10 = vcombine.low %v1686_v0, %v1687_v6  ;;  %v1766_v11 = vpop.permute.xlu0 %1765  ;;  %v1815_v3 = vld [vmem:[#allocation5 + $0x44] ss:$8 sm:$0x3] }
 0x19a   : > { %v1668_v12 = vmul.f32 %v1666_v1, %v1647_v4  ;;  %v1677_v13 = vrot.slane %v1670_v5, %v3041_v36  ;;  %v1726_v14 = vpop.permute.xlu1 %1725 }
 0x19b   : > { %v1638_v15 = vadd.f32 %v1637_v8, %v1627_v7  ;;  %v1701_v16 = vrot.slane %v1694_v10, %v3041_v36  ;;  %v1728_v17 = vsel %vm1727_vm3, %v1724_v59, %v1726_v14  ;;  %v1729_v18 = vsel %vm1727_vm3, %v1726_v14, %v1724_v59  ;;  %v1775_v59 = vld [vmem:[#allocation5 + $0xa4] ss:$8 sm:$0x3]  ;;  %v1817_v8 = vld [vmem:[#allocation5 + $0xa5] ss:$8 sm:$0x3] }
 0x19c   : > { %v1679_v19 = vmul.f32 %v1677_v13, %v1649_v9  ;;  %v1736_v21 = vcombine.low %v1728_v17, %v1729_v18 }
 0x19d   : > { %v1669_v22 = vadd.f32 %v1668_v12, %v1638_v15  ;;  %v1708_v23 = vrot.slane %v1701_v16, %v3041_v36  ;;  %v1712_v24 = vcombine.high %v1701_v16, %v1701_v16  ;;  %v1808_v25 = vpop.permute.xlu0 %1807 }
 0x19e   : > { %v1743_v29 = vrot.slane %v1736_v21, %v3041_v36  ;;  %v1768_v30 = vpop.permute.xlu1 %1767 }
 0x19f   : > { %v1680_v32 = vadd.f32 %v1679_v19, %v1669_v22  ;;  %v1710_v33 = vmul.f32 %v1708_v23, %v1689_v20  ;;  %v1719_v34 = vrot.slane %v1712_v24, %v3041_v36  ;;  %v1770_v38 = vsel %vm1769_vm4, %v1766_v11, %v1768_v30  ;;  %v1857_v19 = vld [vmem:[#allocation5 + $0x45] ss:$8 sm:$0x3]  ;;  %v1859_v24 = vld [vmem:[#allocation5 + $0xa6] ss:$8 sm:$0x3] }
 0x1a0   : > { %v1750_v39 = vrot.slane %v1743_v29, %v3041_v36  ;;  %v1754_v40 = vcombine.high %v1743_v29, %v1743_v29  ;;  %v1771_v41 = vsel %vm1769_vm4, %v1768_v30, %v1766_v11 }
 0x1a1   : > { %v1711_v42 = vadd.f32 %v1710_v33, %v1680_v32  ;;  %v1721_v26 = vmul.f32 %v1719_v34, %v1691_v28  ;;  %v1778_v43 = vcombine.low %v1770_v38, %v1771_v41  ;;  %v1850_v44 = vpop.permute.xlu0 %1849  ;;  %v1899_v33 = vld [vmem:[#allocation5 + $0x46] ss:$8 sm:$0x3] }
 0x1a2   : > { %v1752_v45 = vmul.f32 %v1750_v39, %v1731_v37  ;;  %v1761_v46 = vrot.slane %v1754_v40, %v3041_v36  ;;  %v1810_v47 = vpop.permute.xlu1 %1809 }
 0x1a3   : > { %v1722_v48 = vadd.f32 %v1721_v26, %v1711_v42  ;;  %v1785_v49 = vrot.slane %v1778_v43, %v3041_v36  ;;  %v1812_v50 = vsel %vm1811_vm5, %v1808_v25, %v1810_v47  ;;  %v1813_v51 = vsel %vm1811_vm5, %v1810_v47, %v1808_v25 }
 0x1a4   : > { %v1763_v52 = vmul.f32 %v1761_v46, %v1733_v27  ;;  %v1820_v54 = vcombine.low %v1812_v50, %v1813_v51  ;;  %v1901_v27 = vld [vmem:[#allocation5 + $0xa7] ss:$8 sm:$0x3] }
 0x1a5   : > { %v1753_v55 = vadd.f32 %v1752_v45, %v1722_v48  ;;  %v1792_v56 = vrot.slane %v1785_v49, %v3041_v36  ;;  %v1796_v57 = vcombine.high %v1785_v49, %v1785_v49  ;;  %v1892_v58 = vpop.permute.xlu0 %1891 }
 0x1a6   : > { %v1827_v60 = vrot.slane %v1820_v54, %v3041_v36  ;;  %v1852_v61 = vpop.permute.xlu1 %1851 }
 0x1a7   : > { %v1764_v62 = vadd.f32 %v1763_v52, %v1753_v55  ;;  %v1794_v63 = vmul.f32 %v1792_v56, %v1773_v53  ;;  %v1803_v2 = vrot.slane %v1796_v57, %v3041_v36  ;;  %v1854_v4 = vsel %vm1853_vm6, %v1850_v44, %v1852_v61  ;;  %v1941_v55 = vld [vmem:[#allocation5 + $0x47] ss:$8 sm:$0x3] }
 0x1a8   : > { %v1834_v0 = vrot.slane %v1827_v60, %v3041_v36  ;;  %v1838_v1 = vcombine.high %v1827_v60, %v1827_v60  ;;  %v1855_v5 = vsel %vm1853_vm6, %v1852_v61, %v1850_v44 }
 0x1a9   : > { %v1795_v6 = vadd.f32 %v1794_v63, %v1764_v62  ;;  %v1805_v7 = vmul.f32 %v1803_v2, %v1775_v59  ;;  %v1862_v9 = vcombine.low %v1854_v4, %v1855_v5  ;;  %v1934_v13 = vpop.permute.xlu0 %1933  ;;  %v1943_v62 = vld [vmem:[#allocation5 + $0xb0] ss:$8 sm:$0x3] }
 0x1aa   : > { %v1836_v10 = vmul.f32 %v1834_v0, %v1815_v3  ;;  %v1845_v11 = vrot.slane %v1838_v1, %v3041_v36  ;;  %v1894_v12 = vpop.permute.xlu1 %1893  ;;  %v1983_v5 = vld [vmem:[#allocation5 + $0x50] ss:$8 sm:$0x3] }
 0x1ab   : > { %v1806_v14 = vadd.f32 %v1805_v7, %v1795_v6  ;;  %v1869_v15 = vrot.slane %v1862_v9, %v3041_v36  ;;  %v1896_v16 = vsel %vm1895_vm7, %v1892_v58, %v1894_v12  ;;  %v1897_v17 = vsel %vm1895_vm7, %v1894_v12, %v1892_v58 }
 0x1ac   : > { %v1847_v18 = vmul.f32 %v1845_v11, %v1817_v8  ;;  %v1904_v20 = vcombine.low %v1896_v16, %v1897_v17 }
 0x1ad   : > { %v1837_v21 = vadd.f32 %v1836_v10, %v1806_v14  ;;  %v1876_v22 = vrot.slane %v1869_v15, %v3041_v36  ;;  %v1880_v23 = vcombine.high %v1869_v15, %v1869_v15  ;;  %v1976_v40 = vpop.permute.xlu0 %1975  ;;  %v1985_v15 = vld [vmem:[#allocation5 + $0xb1] ss:$8 sm:$0x3] }
 0x1ae   : > { %v1911_v25 = vrot.slane %v1904_v20, %v3041_v36  ;;  %v1936_v28 = vpop.permute.xlu1 %1935 }
 0x1af   : > { %v1848_v29 = vadd.f32 %v1847_v18, %v1837_v21  ;;  %v1878_v30 = vmul.f32 %v1876_v22, %v1857_v19  ;;  %v1887_v32 = vrot.slane %v1880_v23, %v3041_v36  ;;  %v1938_v34 = vsel %vm1937_vm8, %v1934_v13, %v1936_v28  ;;  %v2025_v21 = vld [vmem:[#allocation5 + $0x51] ss:$8 sm:$0x3] }
 0x1b0   : > { %v1918_v37 = vrot.slane %v1911_v25, %v3041_v36  ;;  %v1922_v38 = vcombine.high %v1911_v25, %v1911_v25  ;;  %v1939_v39 = vsel %vm1937_vm8, %v1936_v28, %v1934_v13 }
 0x1b1   : > { %v1879_v41 = vadd.f32 %v1878_v30, %v1848_v29  ;;  %v1889_v42 = vmul.f32 %v1887_v32, %v1859_v24  ;;  %v1946_v26 = vcombine.low %v1938_v34, %v1939_v39  ;;  %v2018_v57 = vpop.permute.xlu0 %2017  ;;  %v2027_v30 = vld [vmem:[#allocation5 + $0xb2] ss:$8 sm:$0x3] }
 0x1b2   : > { %v1920_v43 = vmul.f32 %v1918_v37, %v1899_v33  ;;  %v1929_v44 = vrot.slane %v1922_v38, %v3041_v36  ;;  %v1978_v45 = vpop.permute.xlu1 %1977 }
 0x1b3   : > { %v1890_v46 = vadd.f32 %v1889_v42, %v1879_v41  ;;  %v1953_v47 = vrot.slane %v1946_v26, %v3041_v36  ;;  %v1980_v48 = vsel %vm1979_vm9, %v1976_v40, %v1978_v45  ;;  %v1981_v49 = vsel %vm1979_vm9, %v1978_v45, %v1976_v40  ;;  %v2067_v40 = vld [vmem:[#allocation5 + $0x52] ss:$8 sm:$0x3] }
 0x1b4   : > { %v1988_v50 = vcombine.low %v1980_v48, %v1981_v49  ;;  %v1931_v52 = vmul.f32 %v1929_v44, %v1901_v27  ;;  %v2069_v48 = vld [vmem:[#allocation5 + $0xb3] ss:$8 sm:$0x3] }
 0x1b5   : > { %v1921_v51 = vadd.f32 %v1920_v43, %v1890_v46  ;;  %v1960_v53 = vrot.slane %v1953_v47, %v3041_v36  ;;  %v1964_v54 = vcombine.high %v1953_v47, %v1953_v47  ;;  %v2060_v8 = vpop.permute.xlu0 %2059 }
 0x1b6   : > { %v2020_v56 = vpop.permute.xlu1 %2019  ;;  %v1995_v58 = vrot.slane %v1988_v50, %v3041_v36 }
 0x1b7   : > { %v1932_v59 = vadd.f32 %v1931_v52, %v1921_v51  ;;  %v1962_v60 = vmul.f32 %v1960_v53, %v1941_v55  ;;  %v1971_v61 = vrot.slane %v1964_v54, %v3041_v36  ;;  %v2022_v63 = vsel %vm2021_vm10, %v2018_v57, %v2020_v56  ;;  %v2109_v54 = vld [vmem:[#allocation5 + $0x53] ss:$8 sm:$0x3] }
 0x1b8   : > { %v2023_v2 = vsel %vm2021_vm10, %v2020_v56, %v2018_v57  ;;  %v2002_v3 = vrot.slane %v1995_v58, %v3041_v36  ;;  %v2006_v4 = vcombine.high %v1995_v58, %v1995_v58 }
 0x1b9   : > { %v1963_v0 = vadd.f32 %v1962_v60, %v1932_v59  ;;  %v1973_v1 = vmul.f32 %v1971_v61, %v1943_v62  ;;  %v2030_v6 = vcombine.low %v2022_v63, %v2023_v2  ;;  %v2102_v23 = vpop.permute.xlu0 %2101  ;;  %v2111_v61 = vld [vmem:[#allocation5 + $0xb4] ss:$8 sm:$0x3] }
 0x1ba   : > { %v2062_v7 = vpop.permute.xlu1 %2061  ;;  %v2004_v9 = vmul.f32 %v2002_v3, %v1983_v5  ;;  %v2013_v10 = vrot.slane %v2006_v4, %v3041_v36 }
 0x1bb   : > { %v1974_v11 = vadd.f32 %v1973_v1, %v1963_v0  ;;  %v2037_v12 = vrot.slane %v2030_v6, %v3041_v36  ;;  %v2064_v13 = vsel %vm2063_vm11, %v2060_v8, %v2062_v7  ;;  %v2065_v14 = vsel %vm2063_vm11, %v2062_v7, %v2060_v8  ;;  %v2151_v1 = vld [vmem:[#allocation5 + $0x54] ss:$8 sm:$0x3] }
 0x1bc   : > { %v2072_v16 = vcombine.low %v2064_v13, %v2065_v14  ;;  %v2015_v18 = vmul.f32 %v2013_v10, %v1985_v15  ;;  %v2153_v14 = vld [vmem:[#allocation5 + $0xb5] ss:$8 sm:$0x3] }
 0x1bd   : > { %v2005_v17 = vadd.f32 %v2004_v9, %v1974_v11  ;;  %v2044_v19 = vrot.slane %v2037_v12, %v3041_v36  ;;  %v2048_v20 = vcombine.high %v2037_v12, %v2037_v12  ;;  %v2144_v26 = vpop.permute.xlu0 %2143 }
 0x1be   : > { %v2104_v22 = vpop.permute.xlu1 %2103  ;;  %v2079_v24 = vrot.slane %v2072_v16, %v3041_v36 }
 0x1bf   : > { %v2016_v25 = vadd.f32 %v2015_v18, %v2005_v17  ;;  %v2046_v28 = vmul.f32 %v2044_v19, %v2025_v21  ;;  %v2055_v29 = vrot.slane %v2048_v20, %v3041_v36  ;;  %v2106_v32 = vsel %vm2105_vm12, %v2102_v23, %v2104_v22  ;;  %v2193_v20 = vld [vmem:[#allocation5 + $0x55] ss:$8 sm:$0x3] }
 0x1c0   : > { %v2107_v33 = vsel %vm2105_vm12, %v2104_v22, %v2102_v23  ;;  %v2086_v34 = vrot.slane %v2079_v24, %v3041_v36  ;;  %v2090_v37 = vcombine.high %v2079_v24, %v2079_v24 }
 0x1c1   : > { %v2047_v38 = vadd.f32 %v2046_v28, %v2016_v25  ;;  %v2057_v39 = vmul.f32 %v2055_v29, %v2027_v30  ;;  %v2114_v41 = vcombine.low %v2106_v32, %v2107_v33  ;;  %v2186_v56 = vpop.permute.xlu0 %2185  ;;  %v2195_v29 = vld [vmem:[#allocation5 + $0xb6] ss:$8 sm:$0x3] }
 0x1c2   : > { %v2146_v42 = vpop.permute.xlu1 %2145  ;;  %v2088_v27 = vmul.f32 %v2086_v34, %v2067_v40  ;;  %v2097_v43 = vrot.slane %v2090_v37, %v3041_v36  ;;  %v2235_v40 = vld [vmem:[#allocation5 + $0x56] ss:$8 sm:$0x3] }
 0x1c3   : > { %v2058_v44 = vadd.f32 %v2057_v39, %v2047_v38  ;;  %v2121_v45 = vrot.slane %v2114_v41, %v3041_v36  ;;  %v2148_v46 = vsel %vm2147_vm13, %v2144_v26, %v2146_v42  ;;  %v2149_v47 = vsel %vm2147_vm13, %v2146_v42, %v2144_v26 }
 0x1c4   : > { %v2156_v49 = vcombine.low %v2148_v46, %v2149_v47  ;;  %v2099_v51 = vmul.f32 %v2097_v43, %v2069_v48  ;;  %v2237_v43 = vld [vmem:[#allocation5 + $0xb7] ss:$8 sm:$0x3] }
 0x1c5   : > { %v2089_v50 = vadd.f32 %v2088_v27, %v2058_v44  ;;  %v2128_v52 = vrot.slane %v2121_v45, %v3041_v36  ;;  %v2132_v53 = vcombine.high %v2121_v45, %v2121_v45  ;;  %v2228_v7 = vpop.permute.xlu0 %2227 }
 0x1c6   : > { %v2188_v55 = vpop.permute.xlu1 %2187  ;;  %v2163_v57 = vrot.slane %v2156_v49, %v3041_v36 }
 0x1c7   : > { %v2100_v58 = vadd.f32 %v2099_v51, %v2089_v50  ;;  %v2130_v59 = vmul.f32 %v2128_v52, %v2109_v54  ;;  %v2139_v60 = vrot.slane %v2132_v53, %v3041_v36  ;;  %v2190_v62 = vsel %vm2189_vm14, %v2186_v56, %v2188_v55  ;;  %v2277_v53 = vld [vmem:[#allocation5 + $0x57] ss:$8 sm:$0x3] }
 0x1c8   : > { %v2191_v63 = vsel %vm2189_vm14, %v2188_v55, %v2186_v56  ;;  %v2170_v2 = vrot.slane %v2163_v57, %v3041_v36  ;;  %v2174_v3 = vcombine.high %v2163_v57, %v2163_v57  ;;  %v2279_v57 = vld [vmem:[#allocation5 + $0xc0] ss:$8 sm:$0x3] }
 0x1c9   : > { %v2131_v4 = vadd.f32 %v2130_v59, %v2100_v58  ;;  %v2141_v0 = vmul.f32 %v2139_v60, %v2111_v61  ;;  %v2198_v5 = vcombine.low %v2190_v62, %v2191_v63  ;;  %v2270_v22 = vpop.permute.xlu0 %2269  ;;  %v2319_v62 = vld [vmem:[#allocation5 + $0x60] ss:$8 sm:$0x3] }
 0x1ca   : > { %v2230_v6 = vpop.permute.xlu1 %2229  ;;  %v2172_v8 = vmul.f32 %v2170_v2, %v2151_v1  ;;  %v2181_v9 = vrot.slane %v2174_v3, %v3041_v36 }
 0x1cb   : > { %v2142_v10 = vadd.f32 %v2141_v0, %v2131_v4  ;;  %v2205_v11 = vrot.slane %v2198_v5, %v3041_v36  ;;  %v2232_v12 = vsel %vm2231_vm15, %v2228_v7, %v2230_v6  ;;  %v2233_v13 = vsel %vm2231_vm15, %v2230_v6, %v2228_v7  ;;  %v2321_v4 = vld [vmem:[#allocation5 + $0xc1] ss:$8 sm:$0x3] }
 0x1cc   : > { %v2240_v15 = vcombine.low %v2232_v12, %v2233_v13  ;;  %v2183_v17 = vmul.f32 %v2181_v9, %v2153_v14  ;;  %v2366_v13 = vsub.s32 1, %v3036_v35 }
 0x1cd   : > { %v2173_v16 = vadd.f32 %v2172_v8, %v2142_v10  ;;  %v2212_v18 = vrot.slane %v2205_v11, %v3041_v36  ;;  %v2216_v19 = vcombine.high %v2205_v11, %v2205_v11  ;;  %v2312_v42 = vpop.permute.xlu0 %2311 }
 0x1ce   : > { %v2272_v21 = vpop.permute.xlu1 %2271  ;;  %v2247_v23 = vrot.slane %v2240_v15, %v3041_v36 }
 0x1cf   : > { %v2184_v24 = vadd.f32 %v2183_v17, %v2173_v16  ;;  %v2214_v25 = vmul.f32 %v2212_v18, %v2193_v20  ;;  %v2223_v28 = vrot.slane %v2216_v19, %v3041_v36  ;;  %v2274_v30 = vsel %vm2273_vm0, %v2270_v22, %v2272_v21  ;;  %v2607_v20 = vld [vmem:[%s2960_s13] sm:$0xff] }
 0x1d0   : > { %v2275_v32 = vsel %vm2273_vm0, %v2272_v21, %v2270_v22  ;;  %v2258_v33 = vcombine.high %v2247_v23, %v2247_v23  ;;  %v2254_v38 = vrot.slane %v2247_v23, %v3041_v36  ;;  %v2608_v22 = vld [vmem:[%s2960_s13 + $0x8] sm:$0xff]  ;;  %s2792_s13 = smov [#allocation7]  }
 0x1d1   : > { %v2215_v34 = vadd.f32 %v2214_v25, %v2184_v24  ;;  %v2225_v37 = vmul.f32 %v2223_v28, %v2195_v29  ;;  %v2282_v39 = vcombine.low %v2274_v30, %v2275_v32  ;;  %s2671_s9 = sshll.u32 %s2792_s13, 4  ;;  %s2672_s9 = int_to_ptr.vmem [resolvable:$false] %s2671_s9 }
 0x1d2   : > { %v2314_v41 = vpop.permute.xlu1 %2313  ;;  %v2265_v26 = vrot.slane %v2258_v33, %v3041_v36  ;;  %v2256_v44 = vmul.f32 %v2254_v38, %v2235_v40  ;;  %s2673_s28 = scalar_lea.vmem %s2672_s9, 512  ;;  %p2674_p10 = scmp.lt.s32.totalorder %s3351_s8, %s2672_s9 }
 0x1d3   : > { %v2226_v27 = vadd.f32 %v2225_v37, %v2215_v34  ;;  %v2289_v45 = vrot.slane %v2282_v39, %v3041_v36  ;;  %v2316_v46 = vsel %vm2315_vm1, %v2312_v42, %v2314_v41  ;;  %v2317_v47 = vsel %vm2315_vm1, %v2314_v41, %v2312_v42  ;;  %p2675_p13 = scmp.lt.s32.totalorder %s2673_s28, %s2667_s11 }
 0x1d4   : > { %v2267_v48 = vmul.f32 %v2265_v26, %v2237_v43  ;;  %v2324_v52 = vcombine.low %v2316_v46, %v2317_v47 }
 0x1d5   : > { %v2257_v49 = vadd.f32 %v2256_v44, %v2226_v27  ;;  %v2296_v50 = vrot.slane %v2289_v45, %v3041_v36  ;;  %v2300_v51 = vcombine.high %v2289_v45, %v2289_v45  ;;  %p2676_p3 = por %p2675_p13, %p2674_p10 }
 0x1d6   : > { %v2331_v56 = vrot.slane %v2324_v52, %v3041_v36 }
 0x1d7   : > { %v2268_v54 = vadd.f32 %v2267_v48, %v2257_v49  ;;  %v2298_v55 = vmul.f32 %v2296_v50, %v2277_v53  ;;  %v2307_v31 = vrot.slane %v2300_v51, %v3041_v36  ;;  %p2677_p7 = pnand %p2676_p3, %p2670_p8 }
 0x1d8   : > { %v2338_v60 = vrot.slane %v2331_v56, %v3041_v36  ;;  %v2342_v61 = vcombine.high %v2331_v56, %v2331_v56 }
 0x1d9   : > { %v2299_v58 = vadd.f32 %v2298_v55, %v2268_v54  ;;  %v2309_v59 = vmul.f32 %v2307_v31, %v2279_v57 }
 0x1da   : > { %v2340_v2 = vmul.f32 %v2338_v60, %v2319_v62  ;;  %v2349_v3 = vrot.slane %v2342_v61, %v3041_v36  ;;  %v2362_v36 = vsub.s32 0, %v3036_v35 }
 0x1db   : > { %v2310_v63 = vadd.f32 %v2309_v59, %v2299_v58 }
 0x1dc   : > { %v2351_v1 = vmul.f32 %v2349_v3, %v2321_v4 }
 0x1dd   : > { %v2341_v0 = vadd.f32 %v2340_v2, %v2310_v63 }
 0x1df   : > { %v2352_v5 = vadd.f32 %v2351_v1, %v2341_v0 }
 0x1e1   : > { %v2483_v6 = vmul.f32 -1.442695, %v2352_v5 }
 0x1e3   : > { %2599 = vpow2.f32 %v2483_v6 }
 0x1ed   : > { %v2600_v9 = vpop.eup %2599 }
 0x1ee   : > { %v2356_v10 = vadd.f32 1.0, %v2600_v9 }
 0x216   : > { %v264_v7 = vpop.xlane.xlu0 %263 }
 0x217   : > { %v2482_v8 = vmul.f32 -1.442695, %v264_v7 }
 0x219   : > { %2601 = vpow2.f32 %v2482_v8 }
 0x21a   : > { %2603 = vrcp.f32 %v2356_v10 }
 0x223   : > { %v2602_v11 = vpop.eup %2601 }
 0x224   : > { %v268_v12 = vadd.f32 1.0, %v2602_v11  ;;  %v2604_v14 = vpop.eup %2603 }
 0x225   : > { %v2363_v15 = vrot.slane %v2604_v14, %v2362_v36  ;;  %v2367_v16 = vrot.slane %v2604_v14, %v2366_v13 }
 0x226   : > { %2605 = vrcp.f32 %v268_v12 }
 0x230   : > { %v2606_v17 = vpop.eup %2605 }
 0x231   : > { %v2370_v18 = vadd.f32 %v2606_v17, %v2363_v15  ;;  %v2371_v19 = vadd.f32 %v2606_v17, %v2367_v16 }
 0x233   : > { %v2372_v21 = vmul.f32 %v2607_v20, %v2370_v18  ;;  %v2373_v23 = vmul.f32 %v2608_v22, %v2371_v19 }
 0x235   : > { %2374 = vst [vmem:[%s228_s26] sm:$0xff] %v2372_v21  ;;  %2375 = vst [vmem:[%s228_s26 + $0x8] sm:$0xff] %v2373_v23 }
 0x236   : > { %2680 = shalt.err (!%p2677_p7)
}
 0x237   : > { %s2681_s25 = scalar_lea.hbm %s3349_s23, 256  ;;  %s2685_s14 = scalar_lea.hbm %s3397_s4, 512 }
 0x238   : > { %p2682_p9 = scmp.ne.s32.totalorder %s3349_s23, %s2681_s25  ;;  %p2686_p0 = scmp.lt.u32.totalorder %s3349_s23, %s3397_s4 }
 0x239   : > { %p2687_p11 = scmp.lt.u32.totalorder %s2685_s14, %s2681_s25  ;;  %p2689_p4 = scmp.lt.u32.totalorder %s2681_s25, %s3349_s23 }
 0x23a   : > { %p2683_p2 = pnand %p2682_p9, %p2909_p12 }
 0x23b   : > { %p2688_p1 = por %p2687_p11, %p2686_p0 }
 0x23c   : > { %p2684_p5 = pneg %p2683_p2 }
 0x23d   : > { %p2690_p6 = por %p2689_p4, %p2688_p1 }
 0x23f   : > { %p2691_p8 = pnand %p2690_p6, %p2684_p5 }
 0x241   : > { %2694 = shalt.err (!%p2691_p8)
}
 0x242   : > { %2497 = dma.vmem_to_hbm [thread:$0]  (%p2909_p12), %s3351_s8, 256, %s3349_s23, %s2377_s19  }
 0x243 PF: > { %s2403_s5 = sand.u32 1, %s2725_s15   ;;  %p3412_p10 = scmp.ne.s32.totalorder %s3402_s22, 0 }
 0x244   : > { %p3413_p13 = scmp.ge.s32.totalorder %s2737_s18, 2  ;;  %s2404_s7 = scalar_lea.sflag [#allocation4], %s2403_s5 }
 0x246   : > { %p2508_p3 = pnand %p3413_p13, %p3412_p10 }
 0x248   : > { %2720 = dma.done.wait (!%p2508_p3), %s2404_s7, 256  }
 0x249   : > { %2722 = vsyncadd (!%p2508_p3), %s2404_s7, 4294967040  ;;  %p18_p7 = scmp.ge.s32.totalorder %s2874_s27, 4   ;;  %s3414_s15 = smov %s2729_s16 }
 0x24a   : > { %s3415_s16 = smov %s2733_s17  ;;  %s3416_s17 = smov %s2905_s24 }
 0x24b   : > { %s3417_s18 = smov %s2874_s27  ;;  %20 = sbr.rel (!%p18_p7) target bundleno = 6 (0x6), region = 182 }
 0x252   :  { %2409 = vsyncpa [#allocation3], 1 }
 0x253   :  { %2411 = vsyncpa [#allocation3 + $0x1], 1 }
 0x254   :  { %2412 = vsyncpa [#allocation6], 1 }
 0x255   :  { %2413 = vsyncpa [#allocation4], 1 }
 0x256   :  { %2415 = vsyncpa [#allocation4 + $0x1], 1 }

</bundles_post_ra>
